<compile_context>
chip_gen: v7x
topology: tpu7x:2x2x1
jax: 0.10.0
libtpu: 0.0.40
codegen_flags: <defaults>
</compile_context>

<pallas_src>
import functools

import numpy as np

import jax
import jax.numpy as jnp
from jax import lax
from jax.experimental import pallas as pl
from jax.experimental.pallas import tpu as pltpu


# ----------------------------------------------------------------------------
# Fused Pallas kernel: whole LeNet-5 forward for ONE sample per grid step.
# ----------------------------------------------------------------------------
def _lenet5_kernel(xp_ref, b1m_ref, b1v_ref, b2m_ref, b2v_ref,
                   w1m_ref, w1v_ref, w2m_ref, w2v_ref, out_ref,
                   *, half1, off1, half2, off2, l1p):
    f32 = jnp.float32

    # ---- conv1: banded MXU matmuls, one per (output-row phase p, row tap di).
    # g[p][m, :] holds conv1 pre-bias output row (4*m + p); lane layout:
    #   [0 : half1]           even output columns  (lane = co*12 + j, s = 2j)
    #   [off1 : off1 + half1] odd  output columns  (lane = co*12 + j, s = 2j+1)
    g = []
    for p in range(4):
        acc = jnp.zeros((6, off1 + half1), f32)
        for di in range(5):
            a = (p + di) % 4                  # input row phase
            c = (p + di) // 4                 # coarse row offset inside phase
            xs = xp_ref[0, a, c:c + 6, :]     # (6, 28) rows 4m + p + di
            acc = acc + jnp.dot(xs, b1m_ref[di], preferred_element_type=f32)
        g.append(acc)

    # ---- conv1 bias + ReLU + 2x2 max-pool (rows via phases, cols via halves).
    b1v = b1v_ref[...]
    h0 = jnp.maximum(jnp.maximum(g[0], g[1]) + b1v, 0.0)   # pooled rows i = 2m
    h1 = jnp.maximum(jnp.maximum(g[2], g[3]) + b1v, 0.0)   # pooled rows i = 2m+1
    a1 = (jnp.maximum(h0[:, :half1], h0[:, off1:off1 + half1]),   # (6, half1)
          jnp.maximum(h1[:, :half1], h1[:, off1:off1 + half1]))   # (6, half1)

    # ---- conv2: banded MXU matmuls over pooled conv1 activations.
    # g2[f][t, :] holds conv2 pre-bias output row (2*t + f); lane layout:
    #   [0 : half2]           even output columns (lane = co*4 + u, s2 = 2u)
    #   [off2 : off2 + half2] odd  output columns (lane = co*4 + u, s2 = 2u+1)
    g2 = []
    for f in range(2):
        acc = jnp.zeros((4, off2 + half2), f32)
        for di in range(5):
            e = (f + di) % 2                  # pooled-row parity
            m0 = (f + di) // 2                # coarse pooled-row offset
            acc = acc + jnp.dot(a1[e][m0:m0 + 4, :], b2m_ref[di],
                                preferred_element_type=f32)
        g2.append(acc)

    # ---- conv2 bias + ReLU + 2x2 max-pool.
    b2v = b2v_ref[...]
    m2 = jnp.maximum(
        b2v + jnp.maximum(
            jnp.maximum(g2[0][:, :half2], g2[0][:, off2:off2 + half2]),
            jnp.maximum(g2[1][:, :half2], g2[1][:, off2:off2 + half2])),
        0.0)                                  # (4, half2): pool2 output

    # ---- fc1 + ReLU: one matmul (4, half2) @ (half2, 4*l1p), then sum the
    # per-pooled-row diagonal lane blocks (weights were pre-permuted/padded).
    t = jnp.dot(m2, w1m_ref[...], preferred_element_type=f32)   # (4, 4*l1p)
    z = w1v_ref[...]
    for i in range(4):
        z = z + t[i:i + 1, i * l1p:(i + 1) * l1p]
    z = jnp.maximum(z, 0.0)                                     # (1, l1p)

    # ---- fc2 (output lane-padded to 128 columns; cols >= 10 are zero).
    out = jnp.dot(z, w2m_ref[...], preferred_element_type=f32) + w2v_ref[...]
    out_ref[0] = out


# ----------------------------------------------------------------------------
# One-time (outside jit) repack of PyTorch-layout params into banded matrices.
# ----------------------------------------------------------------------------
def prepare_params(params):
    w1, b1, w2, b2, fw1, fb1, fw2, fb2 = [np.asarray(p, np.float32) for p in params]
    c1, c2, l1 = w1.shape[0], w2.shape[0], fw1.shape[0]
    assert w1.shape == (c1, 1, 5, 5) and w2.shape == (c2, c1, 5, 5)
    assert fw1.shape == (l1, c2 * 16) and fw2.shape == (fw2.shape[0], l1)
    assert fw2.shape[0] <= 128

    half1 = 12 * c1                       # pooled conv1 lanes per parity half
    off1 = -(-half1 // 128) * 128         # lane-tile-aligned offset of odd half
    half2 = 4 * c2                        # pooled conv2 lanes per parity half
    off2 = -(-half2 // 128) * 128
    l1p = -(-l1 // 128) * 128             # fc1 width padded to 128 lanes

    # conv1 banded matrices: columns s = 2j + par, banded over width taps dj.
    b1m = np.zeros((5, 28, off1 + half1), np.float32)
    for di in range(5):
        for co in range(c1):
            for par in range(2):
                for j in range(12):
                    s = 2 * j + par
                    for dj in range(5):
                        b1m[di, s + dj, par * off1 + co * 12 + j] = w1[co, 0, di, dj]
    b1v = np.zeros((1, off1 + half1), np.float32)
    for co in range(c1):
        for par in range(2):
            b1v[0, par * off1 + co * 12: par * off1 + co * 12 + 12] = b1[co]

    # conv2 banded matrices: rows follow pool1's lane layout (ci*12 + j).
    b2m = np.zeros((5, half1, off2 + half2), np.float32)
    for di in range(5):
        for co in range(c2):
            for ci in range(c1):
                for par in range(2):
                    for u in range(4):
                        s2 = 2 * u + par
                        for dj in range(5):
                            b2m[di, ci * 12 + s2 + dj,
                                par * off2 + co * 4 + u] = w2[co, ci, di, dj]
    b2v = np.zeros((1, half2), np.float32)
    for co in range(c2):
        b2v[0, co * 4: co * 4 + 4] = b2[co]

    # fc1 weights: rows permuted to pool2 lane order (co*4 + u); column block i
    # holds weights for pooled row i (torch NCHW .view order co*16 + i*4 + u).
    w1m = np.zeros((half2, 4 * l1p), np.float32)
    for i in range(4):
        for co in range(c2):
            for u in range(4):
                w1m[co * 4 + u, i * l1p: i * l1p + l1] = fw1[:, co * 16 + i * 4 + u]
    w1v = np.zeros((1, l1p), np.float32)
    w1v[0, :l1] = fb1

    # fc2 weights: pre-transposed and lane-padded to 128 outputs.
    w2m = np.zeros((l1p, 128), np.float32)
    w2m[:l1, :fw2.shape[0]] = fw2.T
    w2v = np.zeros((1, 128), np.float32)
    w2v[0, :fw2.shape[0]] = fb2

    return tuple(jnp.asarray(a) for a in (b1m, b1v, b2m, b2v, w1m, w1v, w2m, w2v))


# ----------------------------------------------------------------------------
# Forward: one fused pallas_call over a per-sample "parallel" batch grid.
# ----------------------------------------------------------------------------
def lenet5_forward(x, prep):
    b1m, b1v, b2m, b2v, w1m, w1v, w2m, w2v = prep
    n = x.shape[0]
    assert x.shape[1:] == (1, 28, 28)

    half1 = b2m.shape[1]
    off1 = b1m.shape[2] - half1
    half2 = b2v.shape[1]
    off2 = b2m.shape[2] - half2
    l1p = w1v.shape[1]

    # Split input rows into 4 phases: xp[n, a, m, :] = x[n, 0, 4*m + a, :]
    # (lets the kernel do stride-2 pooling with unit-stride slices only).
    xp = x.reshape(n, 7, 4, 28).transpose(0, 2, 1, 3)

    kernel = functools.partial(_lenet5_kernel, half1=half1, off1=off1,
                               half2=half2, off2=off2, l1p=l1p)
    out = pl.pallas_call(
        kernel,
        out_shape=jax.ShapeDtypeStruct((n, 1, 128), jnp.float32),
        grid=(n,),
        in_specs=[
            pl.BlockSpec((1, 4, 7, 28), lambda i: (i, 0, 0, 0)),
            pl.BlockSpec(b1m.shape, lambda i: (0, 0, 0)),
            pl.BlockSpec(b1v.shape, lambda i: (0, 0)),
            pl.BlockSpec(b2m.shape, lambda i: (0, 0, 0)),
            pl.BlockSpec(b2v.shape, lambda i: (0, 0)),
            pl.BlockSpec(w1m.shape, lambda i: (0, 0)),
            pl.BlockSpec(w1v.shape, lambda i: (0, 0)),
            pl.BlockSpec(w2m.shape, lambda i: (0, 0)),
            pl.BlockSpec(w2v.shape, lambda i: (0, 0)),
        ],
        out_specs=pl.BlockSpec((1, 1, 128), lambda i: (i, 0, 0)),
        compiler_params=pltpu.CompilerParams(
            dimension_semantics=("parallel",)),
    )(xp, b1m, b1v, b2m, b2v, w1m, w1v, w2m, w2v)
    return out[:, 0, :10]


# ----------------------------------------------------------------------------
# Pure-JAX reference (torch semantics) + deterministic parameter init.
# ----------------------------------------------------------------------------
def lenet5_reference(x, params):
    w1, b1, w2, b2, fw1, fb1, fw2, fb2 = params
    dn = ("NCHW", "OIHW", "NCHW")
    y = lax.conv_general_dilated(x, w1, (1, 1), "VALID", dimension_numbers=dn)
    y = jnp.maximum(y + b1[None, :, None, None], 0.0)
    y = lax.reduce_window(y, -jnp.inf, lax.max, (1, 1, 2, 2), (1, 1, 2, 2), "VALID")
    y = lax.conv_general_dilated(y, w2, (1, 1), "VALID", dimension_numbers=dn)
    y = jnp.maximum(y + b2[None, :, None, None], 0.0)
    y = lax.reduce_window(y, -jnp.inf, lax.max, (1, 1, 2, 2), (1, 1, 2, 2), "VALID")
    y = y.reshape(y.shape[0], -1)
    y = jnp.maximum(y @ fw1.T + fb1, 0.0)
    return y @ fw2.T + fb2


def init_params(key, conv1_out, conv2_out, lin1_out, dtype=jnp.float32):
    ks = jax.random.split(key, 8)

    def unif(k, shape, fan_in):
        bound = 1.0 / jnp.sqrt(jnp.asarray(fan_in, dtype))
        return jax.random.uniform(k, shape, dtype, -bound, bound)

    w1 = unif(ks[0], (conv1_out, 1, 5, 5), 1 * 5 * 5)
    b1 = unif(ks[1], (conv1_out,), 1 * 5 * 5)
    w2 = unif(ks[2], (conv2_out, conv1_out, 5, 5), conv1_out * 5 * 5)
    b2 = unif(ks[3], (conv2_out,), conv1_out * 5 * 5)
    fw1 = unif(ks[4], (lin1_out, conv2_out * 16), conv2_out * 16)
    fb1 = unif(ks[5], (lin1_out,), conv2_out * 16)
    fw2 = unif(ks[6], (10, lin1_out), lin1_out)
    fb2 = unif(ks[7], (10,), lin1_out)
    return (w1, b1, w2, b2, fw1, fb1, fw2, fb2)


if __name__ == "__main__":
    # Classic LeNet-5 sizes; the architecture requires 28x28 single-channel input.
    conv1_out, conv2_out, lin1_out = 6, 16, 120
    batch = 2

    key = jax.random.PRNGKey(0)
    k_x, k_p = jax.random.split(key)
    x = jax.random.normal(k_x, (batch, 1, 28, 28), jnp.float32)
    params = init_params(k_p, conv1_out, conv2_out, lin1_out)
    prep = prepare_params(params)          # one-time weight repack (outside jit)

    fwd = jax.jit(lenet5_forward)
    out = fwd(x, prep)
    jax.block_until_ready(out)
    assert out.shape == (batch, 10), out.shape

    ref = jax.jit(lenet5_reference)(x, params)
    jax.block_until_ready(ref)
    np.testing.assert_allclose(np.asarray(out), np.asarray(ref),
                               rtol=1e-2, atol=1e-2)
    print("KERNEL_OK")
</pallas_src>

<mosaic_0001>
module attributes {stable_mosaic.version = 11 : i64} {
  func.func @_lenet5_kernel(%arg0: i32, %arg1: memref<1x4x7x28xf32, #tpu.memory_space<vmem>>, %arg2: memref<5x28x200xf32, #tpu.memory_space<vmem>>, %arg3: memref<1x200xf32, #tpu.memory_space<vmem>>, %arg4: memref<5x72x192xf32, #tpu.memory_space<vmem>>, %arg5: memref<1x64xf32, #tpu.memory_space<vmem>>, %arg6: memref<64x512xf32, #tpu.memory_space<vmem>>, %arg7: memref<1x128xf32, #tpu.memory_space<vmem>>, %arg8: memref<128x128xf32, #tpu.memory_space<vmem>>, %arg9: memref<1x128xf32, #tpu.memory_space<vmem>>, %arg10: memref<1x1x128xf32, #tpu.memory_space<vmem>>) attributes {dimension_semantics = [#tpu.dimension_semantics<parallel>], iteration_bounds = array<i64: 2>, scalar_prefetch = 0 : i64, scratch_operands = 0 : i64, tpu.core_type = #tpu.core_type<tc>, window_params = [{transform_indices = @transform_0, window_bounds = array<i64: 1, 4, 7, 28>}, {pipeline_mode = #tpu.pipeline_mode<synchronous>, transform_indices = @transform_1, window_bounds = array<i64: 5, 28, 200>}, {pipeline_mode = #tpu.pipeline_mode<synchronous>, transform_indices = @transform_2, window_bounds = array<i64: 1, 200>}, {pipeline_mode = #tpu.pipeline_mode<synchronous>, transform_indices = @transform_3, window_bounds = array<i64: 5, 72, 192>}, {pipeline_mode = #tpu.pipeline_mode<synchronous>, transform_indices = @transform_4, window_bounds = array<i64: 1, 64>}, {pipeline_mode = #tpu.pipeline_mode<synchronous>, transform_indices = @transform_5, window_bounds = array<i64: 64, 512>}, {pipeline_mode = #tpu.pipeline_mode<synchronous>, transform_indices = @transform_6, window_bounds = array<i64: 1, 128>}, {pipeline_mode = #tpu.pipeline_mode<synchronous>, transform_indices = @transform_7, window_bounds = array<i64: 128, 128>}, {pipeline_mode = #tpu.pipeline_mode<synchronous>, transform_indices = @transform_8, window_bounds = array<i64: 1, 128>}, {transform_indices = @transform_9, window_bounds = array<i64: 1, 1, 128>}]} {
    %cst = arith.constant 0.000000e+00 : f32
    %0 = vector.broadcast %cst : f32 to vector<6x200xf32>
    %c0 = arith.constant 0 : index
    %c0_0 = arith.constant 0 : index
    %c0_1 = arith.constant 0 : index
    %c0_2 = arith.constant 0 : index
    %1 = vector.load %arg1[%c0, %c0_0, %c0_1, %c0_2] : memref<1x4x7x28xf32, #tpu.memory_space<vmem>>, vector<1x1x6x28xf32>
    %2 = vector.shape_cast %1 : vector<1x1x6x28xf32> to vector<6x28xf32>
    %c0_3 = arith.constant 0 : index
    %c0_4 = arith.constant 0 : index
    %c0_5 = arith.constant 0 : index
    %3 = vector.load %arg2[%c0_3, %c0_4, %c0_5] : memref<5x28x200xf32, #tpu.memory_space<vmem>>, vector<1x28x200xf32>
    %4 = vector.shape_cast %3 : vector<1x28x200xf32> to vector<28x200xf32>
    %cst_6 = arith.constant dense<0.000000e+00> : vector<6x200xf32>
    %5 = tpu.matmul %2, %4, %cst_6 {dimension_numbers = #tpu.dot_dimension_numbers<[1], [0], [0], [1], [0, 0, 1, 1], [], []>} : vector<6x28xf32>, vector<28x200xf32>, vector<6x200xf32> -> vector<6x200xf32>
    %6 = arith.addf %0, %5 : vector<6x200xf32>
    %c0_7 = arith.constant 0 : index
    %c1 = arith.constant 1 : index
    %c0_8 = arith.constant 0 : index
    %c0_9 = arith.constant 0 : index
    %7 = vector.load %arg1[%c0_7, %c1, %c0_8, %c0_9] : memref<1x4x7x28xf32, #tpu.memory_space<vmem>>, vector<1x1x6x28xf32>
    %8 = vector.shape_cast %7 : vector<1x1x6x28xf32> to vector<6x28xf32>
    %c1_10 = arith.constant 1 : index
    %c0_11 = arith.constant 0 : index
    %c0_12 = arith.constant 0 : index
    %9 = vector.load %arg2[%c1_10, %c0_11, %c0_12] : memref<5x28x200xf32, #tpu.memory_space<vmem>>, vector<1x28x200xf32>
    %10 = vector.shape_cast %9 : vector<1x28x200xf32> to vector<28x200xf32>
    %cst_13 = arith.constant dense<0.000000e+00> : vector<6x200xf32>
    %11 = tpu.matmul %8, %10, %cst_13 {dimension_numbers = #tpu.dot_dimension_numbers<[1], [0], [0], [1], [0, 0, 1, 1], [], []>} : vector<6x28xf32>, vector<28x200xf32>, vector<6x200xf32> -> vector<6x200xf32>
    %12 = arith.addf %6, %11 : vector<6x200xf32>
    %c0_14 = arith.constant 0 : index
    %c2 = arith.constant 2 : index
    %c0_15 = arith.constant 0 : index
    %c0_16 = arith.constant 0 : index
    %13 = vector.load %arg1[%c0_14, %c2, %c0_15, %c0_16] : memref<1x4x7x28xf32, #tpu.memory_space<vmem>>, vector<1x1x6x28xf32>
    %14 = vector.shape_cast %13 : vector<1x1x6x28xf32> to vector<6x28xf32>
    %c2_17 = arith.constant 2 : index
    %c0_18 = arith.constant 0 : index
    %c0_19 = arith.constant 0 : index
    %15 = vector.load %arg2[%c2_17, %c0_18, %c0_19] : memref<5x28x200xf32, #tpu.memory_space<vmem>>, vector<1x28x200xf32>
    %16 = vector.shape_cast %15 : vector<1x28x200xf32> to vector<28x200xf32>
    %cst_20 = arith.constant dense<0.000000e+00> : vector<6x200xf32>
    %17 = tpu.matmul %14, %16, %cst_20 {dimension_numbers = #tpu.dot_dimension_numbers<[1], [0], [0], [1], [0, 0, 1, 1], [], []>} : vector<6x28xf32>, vector<28x200xf32>, vector<6x200xf32> -> vector<6x200xf32>
    %18 = arith.addf %12, %17 : vector<6x200xf32>
    %c0_21 = arith.constant 0 : index
    %c3 = arith.constant 3 : index
    %c0_22 = arith.constant 0 : index
    %c0_23 = arith.constant 0 : index
    %19 = vector.load %arg1[%c0_21, %c3, %c0_22, %c0_23] : memref<1x4x7x28xf32, #tpu.memory_space<vmem>>, vector<1x1x6x28xf32>
    %20 = vector.shape_cast %19 : vector<1x1x6x28xf32> to vector<6x28xf32>
    %c3_24 = arith.constant 3 : index
    %c0_25 = arith.constant 0 : index
    %c0_26 = arith.constant 0 : index
    %21 = vector.load %arg2[%c3_24, %c0_25, %c0_26] : memref<5x28x200xf32, #tpu.memory_space<vmem>>, vector<1x28x200xf32>
    %22 = vector.shape_cast %21 : vector<1x28x200xf32> to vector<28x200xf32>
    %cst_27 = arith.constant dense<0.000000e+00> : vector<6x200xf32>
    %23 = tpu.matmul %20, %22, %cst_27 {dimension_numbers = #tpu.dot_dimension_numbers<[1], [0], [0], [1], [0, 0, 1, 1], [], []>} : vector<6x28xf32>, vector<28x200xf32>, vector<6x200xf32> -> vector<6x200xf32>
    %24 = arith.addf %18, %23 : vector<6x200xf32>
    %c0_28 = arith.constant 0 : index
    %c0_29 = arith.constant 0 : index
    %c1_30 = arith.constant 1 : index
    %c0_31 = arith.constant 0 : index
    %25 = vector.load %arg1[%c0_28, %c0_29, %c1_30, %c0_31] : memref<1x4x7x28xf32, #tpu.memory_space<vmem>>, vector<1x1x6x28xf32>
    %26 = vector.shape_cast %25 : vector<1x1x6x28xf32> to vector<6x28xf32>
    %c4 = arith.constant 4 : index
    %c0_32 = arith.constant 0 : index
    %c0_33 = arith.constant 0 : index
    %27 = vector.load %arg2[%c4, %c0_32, %c0_33] : memref<5x28x200xf32, #tpu.memory_space<vmem>>, vector<1x28x200xf32>
    %28 = vector.shape_cast %27 : vector<1x28x200xf32> to vector<28x200xf32>
    %cst_34 = arith.constant dense<0.000000e+00> : vector<6x200xf32>
    %29 = tpu.matmul %26, %28, %cst_34 {dimension_numbers = #tpu.dot_dimension_numbers<[1], [0], [0], [1], [0, 0, 1, 1], [], []>} : vector<6x28xf32>, vector<28x200xf32>, vector<6x200xf32> -> vector<6x200xf32>
    %30 = arith.addf %24, %29 : vector<6x200xf32>
    %cst_35 = arith.constant 0.000000e+00 : f32
    %31 = vector.broadcast %cst_35 : f32 to vector<6x200xf32>
    %c0_36 = arith.constant 0 : index
    %c1_37 = arith.constant 1 : index
    %c0_38 = arith.constant 0 : index
    %c0_39 = arith.constant 0 : index
    %32 = vector.load %arg1[%c0_36, %c1_37, %c0_38, %c0_39] : memref<1x4x7x28xf32, #tpu.memory_space<vmem>>, vector<1x1x6x28xf32>
    %33 = vector.shape_cast %32 : vector<1x1x6x28xf32> to vector<6x28xf32>
    %c0_40 = arith.constant 0 : index
    %c0_41 = arith.constant 0 : index
    %c0_42 = arith.constant 0 : index
    %34 = vector.load %arg2[%c0_40, %c0_41, %c0_42] : memref<5x28x200xf32, #tpu.memory_space<vmem>>, vector<1x28x200xf32>
    %35 = vector.shape_cast %34 : vector<1x28x200xf32> to vector<28x200xf32>
    %cst_43 = arith.constant dense<0.000000e+00> : vector<6x200xf32>
    %36 = tpu.matmul %33, %35, %cst_43 {dimension_numbers = #tpu.dot_dimension_numbers<[1], [0], [0], [1], [0, 0, 1, 1], [], []>} : vector<6x28xf32>, vector<28x200xf32>, vector<6x200xf32> -> vector<6x200xf32>
    %37 = arith.addf %31, %36 : vector<6x200xf32>
    %c0_44 = arith.constant 0 : index
    %c2_45 = arith.constant 2 : index
    %c0_46 = arith.constant 0 : index
    %c0_47 = arith.constant 0 : index
    %38 = vector.load %arg1[%c0_44, %c2_45, %c0_46, %c0_47] : memref<1x4x7x28xf32, #tpu.memory_space<vmem>>, vector<1x1x6x28xf32>
    %39 = vector.shape_cast %38 : vector<1x1x6x28xf32> to vector<6x28xf32>
    %c1_48 = arith.constant 1 : index
    %c0_49 = arith.constant 0 : index
    %c0_50 = arith.constant 0 : index
    %40 = vector.load %arg2[%c1_48, %c0_49, %c0_50] : memref<5x28x200xf32, #tpu.memory_space<vmem>>, vector<1x28x200xf32>
    %41 = vector.shape_cast %40 : vector<1x28x200xf32> to vector<28x200xf32>
    %cst_51 = arith.constant dense<0.000000e+00> : vector<6x200xf32>
    %42 = tpu.matmul %39, %41, %cst_51 {dimension_numbers = #tpu.dot_dimension_numbers<[1], [0], [0], [1], [0, 0, 1, 1], [], []>} : vector<6x28xf32>, vector<28x200xf32>, vector<6x200xf32> -> vector<6x200xf32>
    %43 = arith.addf %37, %42 : vector<6x200xf32>
    %c0_52 = arith.constant 0 : index
    %c3_53 = arith.constant 3 : index
    %c0_54 = arith.constant 0 : index
    %c0_55 = arith.constant 0 : index
    %44 = vector.load %arg1[%c0_52, %c3_53, %c0_54, %c0_55] : memref<1x4x7x28xf32, #tpu.memory_space<vmem>>, vector<1x1x6x28xf32>
    %45 = vector.shape_cast %44 : vector<1x1x6x28xf32> to vector<6x28xf32>
    %c2_56 = arith.constant 2 : index
    %c0_57 = arith.constant 0 : index
    %c0_58 = arith.constant 0 : index
    %46 = vector.load %arg2[%c2_56, %c0_57, %c0_58] : memref<5x28x200xf32, #tpu.memory_space<vmem>>, vector<1x28x200xf32>
    %47 = vector.shape_cast %46 : vector<1x28x200xf32> to vector<28x200xf32>
    %cst_59 = arith.constant dense<0.000000e+00> : vector<6x200xf32>
    %48 = tpu.matmul %45, %47, %cst_59 {dimension_numbers = #tpu.dot_dimension_numbers<[1], [0], [0], [1], [0, 0, 1, 1], [], []>} : vector<6x28xf32>, vector<28x200xf32>, vector<6x200xf32> -> vector<6x200xf32>
    %49 = arith.addf %43, %48 : vector<6x200xf32>
    %c0_60 = arith.constant 0 : index
    %c0_61 = arith.constant 0 : index
    %c1_62 = arith.constant 1 : index
    %c0_63 = arith.constant 0 : index
    %50 = vector.load %arg1[%c0_60, %c0_61, %c1_62, %c0_63] : memref<1x4x7x28xf32, #tpu.memory_space<vmem>>, vector<1x1x6x28xf32>
    %51 = vector.shape_cast %50 : vector<1x1x6x28xf32> to vector<6x28xf32>
    %c3_64 = arith.constant 3 : index
    %c0_65 = arith.constant 0 : index
    %c0_66 = arith.constant 0 : index
    %52 = vector.load %arg2[%c3_64, %c0_65, %c0_66] : memref<5x28x200xf32, #tpu.memory_space<vmem>>, vector<1x28x200xf32>
    %53 = vector.shape_cast %52 : vector<1x28x200xf32> to vector<28x200xf32>
    %cst_67 = arith.constant dense<0.000000e+00> : vector<6x200xf32>
    %54 = tpu.matmul %51, %53, %cst_67 {dimension_numbers = #tpu.dot_dimension_numbers<[1], [0], [0], [1], [0, 0, 1, 1], [], []>} : vector<6x28xf32>, vector<28x200xf32>, vector<6x200xf32> -> vector<6x200xf32>
    %55 = arith.addf %49, %54 : vector<6x200xf32>
    %c0_68 = arith.constant 0 : index
    %c1_69 = arith.constant 1 : index
    %c1_70 = arith.constant 1 : index
    %c0_71 = arith.constant 0 : index
    %56 = vector.load %arg1[%c0_68, %c1_69, %c1_70, %c0_71] : memref<1x4x7x28xf32, #tpu.memory_space<vmem>>, vector<1x1x6x28xf32>
    %57 = vector.shape_cast %56 : vector<1x1x6x28xf32> to vector<6x28xf32>
    %c4_72 = arith.constant 4 : index
    %c0_73 = arith.constant 0 : index
    %c0_74 = arith.constant 0 : index
    %58 = vector.load %arg2[%c4_72, %c0_73, %c0_74] : memref<5x28x200xf32, #tpu.memory_space<vmem>>, vector<1x28x200xf32>
    %59 = vector.shape_cast %58 : vector<1x28x200xf32> to vector<28x200xf32>
    %cst_75 = arith.constant dense<0.000000e+00> : vector<6x200xf32>
    %60 = tpu.matmul %57, %59, %cst_75 {dimension_numbers = #tpu.dot_dimension_numbers<[1], [0], [0], [1], [0, 0, 1, 1], [], []>} : vector<6x28xf32>, vector<28x200xf32>, vector<6x200xf32> -> vector<6x200xf32>
    %61 = arith.addf %55, %60 : vector<6x200xf32>
    %cst_76 = arith.constant 0.000000e+00 : f32
    %62 = vector.broadcast %cst_76 : f32 to vector<6x200xf32>
    %c0_77 = arith.constant 0 : index
    %c2_78 = arith.constant 2 : index
    %c0_79 = arith.constant 0 : index
    %c0_80 = arith.constant 0 : index
    %63 = vector.load %arg1[%c0_77, %c2_78, %c0_79, %c0_80] : memref<1x4x7x28xf32, #tpu.memory_space<vmem>>, vector<1x1x6x28xf32>
    %64 = vector.shape_cast %63 : vector<1x1x6x28xf32> to vector<6x28xf32>
    %c0_81 = arith.constant 0 : index
    %c0_82 = arith.constant 0 : index
    %c0_83 = arith.constant 0 : index
    %65 = vector.load %arg2[%c0_81, %c0_82, %c0_83] : memref<5x28x200xf32, #tpu.memory_space<vmem>>, vector<1x28x200xf32>
    %66 = vector.shape_cast %65 : vector<1x28x200xf32> to vector<28x200xf32>
    %cst_84 = arith.constant dense<0.000000e+00> : vector<6x200xf32>
    %67 = tpu.matmul %64, %66, %cst_84 {dimension_numbers = #tpu.dot_dimension_numbers<[1], [0], [0], [1], [0, 0, 1, 1], [], []>} : vector<6x28xf32>, vector<28x200xf32>, vector<6x200xf32> -> vector<6x200xf32>
    %68 = arith.addf %62, %67 : vector<6x200xf32>
    %c0_85 = arith.constant 0 : index
    %c3_86 = arith.constant 3 : index
    %c0_87 = arith.constant 0 : index
    %c0_88 = arith.constant 0 : index
    %69 = vector.load %arg1[%c0_85, %c3_86, %c0_87, %c0_88] : memref<1x4x7x28xf32, #tpu.memory_space<vmem>>, vector<1x1x6x28xf32>
    %70 = vector.shape_cast %69 : vector<1x1x6x28xf32> to vector<6x28xf32>
    %c1_89 = arith.constant 1 : index
    %c0_90 = arith.constant 0 : index
    %c0_91 = arith.constant 0 : index
    %71 = vector.load %arg2[%c1_89, %c0_90, %c0_91] : memref<5x28x200xf32, #tpu.memory_space<vmem>>, vector<1x28x200xf32>
    %72 = vector.shape_cast %71 : vector<1x28x200xf32> to vector<28x200xf32>
    %cst_92 = arith.constant dense<0.000000e+00> : vector<6x200xf32>
    %73 = tpu.matmul %70, %72, %cst_92 {dimension_numbers = #tpu.dot_dimension_numbers<[1], [0], [0], [1], [0, 0, 1, 1], [], []>} : vector<6x28xf32>, vector<28x200xf32>, vector<6x200xf32> -> vector<6x200xf32>
    %74 = arith.addf %68, %73 : vector<6x200xf32>
    %c0_93 = arith.constant 0 : index
    %c0_94 = arith.constant 0 : index
    %c1_95 = arith.constant 1 : index
    %c0_96 = arith.constant 0 : index
    %75 = vector.load %arg1[%c0_93, %c0_94, %c1_95, %c0_96] : memref<1x4x7x28xf32, #tpu.memory_space<vmem>>, vector<1x1x6x28xf32>
    %76 = vector.shape_cast %75 : vector<1x1x6x28xf32> to vector<6x28xf32>
    %c2_97 = arith.constant 2 : index
    %c0_98 = arith.constant 0 : index
    %c0_99 = arith.constant 0 : index
    %77 = vector.load %arg2[%c2_97, %c0_98, %c0_99] : memref<5x28x200xf32, #tpu.memory_space<vmem>>, vector<1x28x200xf32>
    %78 = vector.shape_cast %77 : vector<1x28x200xf32> to vector<28x200xf32>
    %cst_100 = arith.constant dense<0.000000e+00> : vector<6x200xf32>
    %79 = tpu.matmul %76, %78, %cst_100 {dimension_numbers = #tpu.dot_dimension_numbers<[1], [0], [0], [1], [0, 0, 1, 1], [], []>} : vector<6x28xf32>, vector<28x200xf32>, vector<6x200xf32> -> vector<6x200xf32>
    %80 = arith.addf %74, %79 : vector<6x200xf32>
    %c0_101 = arith.constant 0 : index
    %c1_102 = arith.constant 1 : index
    %c1_103 = arith.constant 1 : index
    %c0_104 = arith.constant 0 : index
    %81 = vector.load %arg1[%c0_101, %c1_102, %c1_103, %c0_104] : memref<1x4x7x28xf32, #tpu.memory_space<vmem>>, vector<1x1x6x28xf32>
    %82 = vector.shape_cast %81 : vector<1x1x6x28xf32> to vector<6x28xf32>
    %c3_105 = arith.constant 3 : index
    %c0_106 = arith.constant 0 : index
    %c0_107 = arith.constant 0 : index
    %83 = vector.load %arg2[%c3_105, %c0_106, %c0_107] : memref<5x28x200xf32, #tpu.memory_space<vmem>>, vector<1x28x200xf32>
    %84 = vector.shape_cast %83 : vector<1x28x200xf32> to vector<28x200xf32>
    %cst_108 = arith.constant dense<0.000000e+00> : vector<6x200xf32>
    %85 = tpu.matmul %82, %84, %cst_108 {dimension_numbers = #tpu.dot_dimension_numbers<[1], [0], [0], [1], [0, 0, 1, 1], [], []>} : vector<6x28xf32>, vector<28x200xf32>, vector<6x200xf32> -> vector<6x200xf32>
    %86 = arith.addf %80, %85 : vector<6x200xf32>
    %c0_109 = arith.constant 0 : index
    %c2_110 = arith.constant 2 : index
    %c1_111 = arith.constant 1 : index
    %c0_112 = arith.constant 0 : index
    %87 = vector.load %arg1[%c0_109, %c2_110, %c1_111, %c0_112] : memref<1x4x7x28xf32, #tpu.memory_space<vmem>>, vector<1x1x6x28xf32>
    %88 = vector.shape_cast %87 : vector<1x1x6x28xf32> to vector<6x28xf32>
    %c4_113 = arith.constant 4 : index
    %c0_114 = arith.constant 0 : index
    %c0_115 = arith.constant 0 : index
    %89 = vector.load %arg2[%c4_113, %c0_114, %c0_115] : memref<5x28x200xf32, #tpu.memory_space<vmem>>, vector<1x28x200xf32>
    %90 = vector.shape_cast %89 : vector<1x28x200xf32> to vector<28x200xf32>
    %cst_116 = arith.constant dense<0.000000e+00> : vector<6x200xf32>
    %91 = tpu.matmul %88, %90, %cst_116 {dimension_numbers = #tpu.dot_dimension_numbers<[1], [0], [0], [1], [0, 0, 1, 1], [], []>} : vector<6x28xf32>, vector<28x200xf32>, vector<6x200xf32> -> vector<6x200xf32>
    %92 = arith.addf %86, %91 : vector<6x200xf32>
    %cst_117 = arith.constant 0.000000e+00 : f32
    %93 = vector.broadcast %cst_117 : f32 to vector<6x200xf32>
    %c0_118 = arith.constant 0 : index
    %c3_119 = arith.constant 3 : index
    %c0_120 = arith.constant 0 : index
    %c0_121 = arith.constant 0 : index
    %94 = vector.load %arg1[%c0_118, %c3_119, %c0_120, %c0_121] : memref<1x4x7x28xf32, #tpu.memory_space<vmem>>, vector<1x1x6x28xf32>
    %95 = vector.shape_cast %94 : vector<1x1x6x28xf32> to vector<6x28xf32>
    %c0_122 = arith.constant 0 : index
    %c0_123 = arith.constant 0 : index
    %c0_124 = arith.constant 0 : index
    %96 = vector.load %arg2[%c0_122, %c0_123, %c0_124] : memref<5x28x200xf32, #tpu.memory_space<vmem>>, vector<1x28x200xf32>
    %97 = vector.shape_cast %96 : vector<1x28x200xf32> to vector<28x200xf32>
    %cst_125 = arith.constant dense<0.000000e+00> : vector<6x200xf32>
    %98 = tpu.matmul %95, %97, %cst_125 {dimension_numbers = #tpu.dot_dimension_numbers<[1], [0], [0], [1], [0, 0, 1, 1], [], []>} : vector<6x28xf32>, vector<28x200xf32>, vector<6x200xf32> -> vector<6x200xf32>
    %99 = arith.addf %93, %98 : vector<6x200xf32>
    %c0_126 = arith.constant 0 : index
    %c0_127 = arith.constant 0 : index
    %c1_128 = arith.constant 1 : index
    %c0_129 = arith.constant 0 : index
    %100 = vector.load %arg1[%c0_126, %c0_127, %c1_128, %c0_129] : memref<1x4x7x28xf32, #tpu.memory_space<vmem>>, vector<1x1x6x28xf32>
    %101 = vector.shape_cast %100 : vector<1x1x6x28xf32> to vector<6x28xf32>
    %c1_130 = arith.constant 1 : index
    %c0_131 = arith.constant 0 : index
    %c0_132 = arith.constant 0 : index
    %102 = vector.load %arg2[%c1_130, %c0_131, %c0_132] : memref<5x28x200xf32, #tpu.memory_space<vmem>>, vector<1x28x200xf32>
    %103 = vector.shape_cast %102 : vector<1x28x200xf32> to vector<28x200xf32>
    %cst_133 = arith.constant dense<0.000000e+00> : vector<6x200xf32>
    %104 = tpu.matmul %101, %103, %cst_133 {dimension_numbers = #tpu.dot_dimension_numbers<[1], [0], [0], [1], [0, 0, 1, 1], [], []>} : vector<6x28xf32>, vector<28x200xf32>, vector<6x200xf32> -> vector<6x200xf32>
    %105 = arith.addf %99, %104 : vector<6x200xf32>
    %c0_134 = arith.constant 0 : index
    %c1_135 = arith.constant 1 : index
    %c1_136 = arith.constant 1 : index
    %c0_137 = arith.constant 0 : index
    %106 = vector.load %arg1[%c0_134, %c1_135, %c1_136, %c0_137] : memref<1x4x7x28xf32, #tpu.memory_space<vmem>>, vector<1x1x6x28xf32>
    %107 = vector.shape_cast %106 : vector<1x1x6x28xf32> to vector<6x28xf32>
    %c2_138 = arith.constant 2 : index
    %c0_139 = arith.constant 0 : index
    %c0_140 = arith.constant 0 : index
    %108 = vector.load %arg2[%c2_138, %c0_139, %c0_140] : memref<5x28x200xf32, #tpu.memory_space<vmem>>, vector<1x28x200xf32>
    %109 = vector.shape_cast %108 : vector<1x28x200xf32> to vector<28x200xf32>
    %cst_141 = arith.constant dense<0.000000e+00> : vector<6x200xf32>
    %110 = tpu.matmul %107, %109, %cst_141 {dimension_numbers = #tpu.dot_dimension_numbers<[1], [0], [0], [1], [0, 0, 1, 1], [], []>} : vector<6x28xf32>, vector<28x200xf32>, vector<6x200xf32> -> vector<6x200xf32>
    %111 = arith.addf %105, %110 : vector<6x200xf32>
    %c0_142 = arith.constant 0 : index
    %c2_143 = arith.constant 2 : index
    %c1_144 = arith.constant 1 : index
    %c0_145 = arith.constant 0 : index
    %112 = vector.load %arg1[%c0_142, %c2_143, %c1_144, %c0_145] : memref<1x4x7x28xf32, #tpu.memory_space<vmem>>, vector<1x1x6x28xf32>
    %113 = vector.shape_cast %112 : vector<1x1x6x28xf32> to vector<6x28xf32>
    %c3_146 = arith.constant 3 : index
    %c0_147 = arith.constant 0 : index
    %c0_148 = arith.constant 0 : index
    %114 = vector.load %arg2[%c3_146, %c0_147, %c0_148] : memref<5x28x200xf32, #tpu.memory_space<vmem>>, vector<1x28x200xf32>
    %115 = vector.shape_cast %114 : vector<1x28x200xf32> to vector<28x200xf32>
    %cst_149 = arith.constant dense<0.000000e+00> : vector<6x200xf32>
    %116 = tpu.matmul %113, %115, %cst_149 {dimension_numbers = #tpu.dot_dimension_numbers<[1], [0], [0], [1], [0, 0, 1, 1], [], []>} : vector<6x28xf32>, vector<28x200xf32>, vector<6x200xf32> -> vector<6x200xf32>
    %117 = arith.addf %111, %116 : vector<6x200xf32>
    %c0_150 = arith.constant 0 : index
    %c3_151 = arith.constant 3 : index
    %c1_152 = arith.constant 1 : index
    %c0_153 = arith.constant 0 : index
    %118 = vector.load %arg1[%c0_150, %c3_151, %c1_152, %c0_153] : memref<1x4x7x28xf32, #tpu.memory_space<vmem>>, vector<1x1x6x28xf32>
    %119 = vector.shape_cast %118 : vector<1x1x6x28xf32> to vector<6x28xf32>
    %c4_154 = arith.constant 4 : index
    %c0_155 = arith.constant 0 : index
    %c0_156 = arith.constant 0 : index
    %120 = vector.load %arg2[%c4_154, %c0_155, %c0_156] : memref<5x28x200xf32, #tpu.memory_space<vmem>>, vector<1x28x200xf32>
    %121 = vector.shape_cast %120 : vector<1x28x200xf32> to vector<28x200xf32>
    %cst_157 = arith.constant dense<0.000000e+00> : vector<6x200xf32>
    %122 = tpu.matmul %119, %121, %cst_157 {dimension_numbers = #tpu.dot_dimension_numbers<[1], [0], [0], [1], [0, 0, 1, 1], [], []>} : vector<6x28xf32>, vector<28x200xf32>, vector<6x200xf32> -> vector<6x200xf32>
    %123 = arith.addf %117, %122 : vector<6x200xf32>
    %c0_158 = arith.constant 0 : index
    %c0_159 = arith.constant 0 : index
    %124 = vector.load %arg3[%c0_158, %c0_159] : memref<1x200xf32, #tpu.memory_space<vmem>>, vector<1x200xf32>
    %125 = arith.maximumf %30, %61 : vector<6x200xf32>
    %126 = vector.broadcast %124 : vector<1x200xf32> to vector<6x200xf32>
    %127 = arith.addf %125, %126 : vector<6x200xf32>
    %cst_160 = arith.constant 0.000000e+00 : f32
    %128 = vector.broadcast %cst_160 : f32 to vector<6x200xf32>
    %129 = arith.maximumf %127, %128 : vector<6x200xf32>
    %130 = arith.maximumf %92, %123 : vector<6x200xf32>
    %131 = vector.broadcast %124 : vector<1x200xf32> to vector<6x200xf32>
    %132 = arith.addf %130, %131 : vector<6x200xf32>
    %cst_161 = arith.constant 0.000000e+00 : f32
    %133 = vector.broadcast %cst_161 : f32 to vector<6x200xf32>
    %134 = arith.maximumf %132, %133 : vector<6x200xf32>
    %135 = vector.extract_strided_slice %129 {offsets = [0, 0], sizes = [6, 72], strides = [1, 1]} : vector<6x200xf32> to vector<6x72xf32>
    %136 = vector.extract_strided_slice %129 {offsets = [0, 128], sizes = [6, 72], strides = [1, 1]} : vector<6x200xf32> to vector<6x72xf32>
    %137 = arith.maximumf %135, %136 : vector<6x72xf32>
    %138 = vector.extract_strided_slice %134 {offsets = [0, 0], sizes = [6, 72], strides = [1, 1]} : vector<6x200xf32> to vector<6x72xf32>
    %139 = vector.extract_strided_slice %134 {offsets = [0, 128], sizes = [6, 72], strides = [1, 1]} : vector<6x200xf32> to vector<6x72xf32>
    %140 = arith.maximumf %138, %139 : vector<6x72xf32>
    %cst_162 = arith.constant 0.000000e+00 : f32
    %141 = vector.broadcast %cst_162 : f32 to vector<4x192xf32>
    %142 = vector.extract_strided_slice %137 {offsets = [0, 0], sizes = [4, 72], strides = [1, 1]} : vector<6x72xf32> to vector<4x72xf32>
    %c0_163 = arith.constant 0 : index
    %c0_164 = arith.constant 0 : index
    %c0_165 = arith.constant 0 : index
    %143 = vector.load %arg4[%c0_163, %c0_164, %c0_165] : memref<5x72x192xf32, #tpu.memory_space<vmem>>, vector<1x72x192xf32>
    %144 = vector.shape_cast %143 : vector<1x72x192xf32> to vector<72x192xf32>
    %cst_166 = arith.constant dense<0.000000e+00> : vector<4x192xf32>
    %145 = tpu.matmul %142, %144, %cst_166 {dimension_numbers = #tpu.dot_dimension_numbers<[1], [0], [0], [1], [0, 0, 1, 1], [], []>} : vector<4x72xf32>, vector<72x192xf32>, vector<4x192xf32> -> vector<4x192xf32>
    %146 = arith.addf %141, %145 : vector<4x192xf32>
    %147 = vector.extract_strided_slice %140 {offsets = [0, 0], sizes = [4, 72], strides = [1, 1]} : vector<6x72xf32> to vector<4x72xf32>
    %c1_167 = arith.constant 1 : index
    %c0_168 = arith.constant 0 : index
    %c0_169 = arith.constant 0 : index
    %148 = vector.load %arg4[%c1_167, %c0_168, %c0_169] : memref<5x72x192xf32, #tpu.memory_space<vmem>>, vector<1x72x192xf32>
    %149 = vector.shape_cast %148 : vector<1x72x192xf32> to vector<72x192xf32>
    %cst_170 = arith.constant dense<0.000000e+00> : vector<4x192xf32>
    %150 = tpu.matmul %147, %149, %cst_170 {dimension_numbers = #tpu.dot_dimension_numbers<[1], [0], [0], [1], [0, 0, 1, 1], [], []>} : vector<4x72xf32>, vector<72x192xf32>, vector<4x192xf32> -> vector<4x192xf32>
    %151 = arith.addf %146, %150 : vector<4x192xf32>
    %152 = vector.extract_strided_slice %137 {offsets = [1, 0], sizes = [4, 72], strides = [1, 1]} : vector<6x72xf32> to vector<4x72xf32>
    %c2_171 = arith.constant 2 : index
    %c0_172 = arith.constant 0 : index
    %c0_173 = arith.constant 0 : index
    %153 = vector.load %arg4[%c2_171, %c0_172, %c0_173] : memref<5x72x192xf32, #tpu.memory_space<vmem>>, vector<1x72x192xf32>
    %154 = vector.shape_cast %153 : vector<1x72x192xf32> to vector<72x192xf32>
    %cst_174 = arith.constant dense<0.000000e+00> : vector<4x192xf32>
    %155 = tpu.matmul %152, %154, %cst_174 {dimension_numbers = #tpu.dot_dimension_numbers<[1], [0], [0], [1], [0, 0, 1, 1], [], []>} : vector<4x72xf32>, vector<72x192xf32>, vector<4x192xf32> -> vector<4x192xf32>
    %156 = arith.addf %151, %155 : vector<4x192xf32>
    %157 = vector.extract_strided_slice %140 {offsets = [1, 0], sizes = [4, 72], strides = [1, 1]} : vector<6x72xf32> to vector<4x72xf32>
    %c3_175 = arith.constant 3 : index
    %c0_176 = arith.constant 0 : index
    %c0_177 = arith.constant 0 : index
    %158 = vector.load %arg4[%c3_175, %c0_176, %c0_177] : memref<5x72x192xf32, #tpu.memory_space<vmem>>, vector<1x72x192xf32>
    %159 = vector.shape_cast %158 : vector<1x72x192xf32> to vector<72x192xf32>
    %cst_178 = arith.constant dense<0.000000e+00> : vector<4x192xf32>
    %160 = tpu.matmul %157, %159, %cst_178 {dimension_numbers = #tpu.dot_dimension_numbers<[1], [0], [0], [1], [0, 0, 1, 1], [], []>} : vector<4x72xf32>, vector<72x192xf32>, vector<4x192xf32> -> vector<4x192xf32>
    %161 = arith.addf %156, %160 : vector<4x192xf32>
    %162 = vector.extract_strided_slice %137 {offsets = [2, 0], sizes = [4, 72], strides = [1, 1]} : vector<6x72xf32> to vector<4x72xf32>
    %c4_179 = arith.constant 4 : index
    %c0_180 = arith.constant 0 : index
    %c0_181 = arith.constant 0 : index
    %163 = vector.load %arg4[%c4_179, %c0_180, %c0_181] : memref<5x72x192xf32, #tpu.memory_space<vmem>>, vector<1x72x192xf32>
    %164 = vector.shape_cast %163 : vector<1x72x192xf32> to vector<72x192xf32>
    %cst_182 = arith.constant dense<0.000000e+00> : vector<4x192xf32>
    %165 = tpu.matmul %162, %164, %cst_182 {dimension_numbers = #tpu.dot_dimension_numbers<[1], [0], [0], [1], [0, 0, 1, 1], [], []>} : vector<4x72xf32>, vector<72x192xf32>, vector<4x192xf32> -> vector<4x192xf32>
    %166 = arith.addf %161, %165 : vector<4x192xf32>
    %cst_183 = arith.constant 0.000000e+00 : f32
    %167 = vector.broadcast %cst_183 : f32 to vector<4x192xf32>
    %168 = vector.extract_strided_slice %140 {offsets = [0, 0], sizes = [4, 72], strides = [1, 1]} : vector<6x72xf32> to vector<4x72xf32>
    %c0_184 = arith.constant 0 : index
    %c0_185 = arith.constant 0 : index
    %c0_186 = arith.constant 0 : index
    %169 = vector.load %arg4[%c0_184, %c0_185, %c0_186] : memref<5x72x192xf32, #tpu.memory_space<vmem>>, vector<1x72x192xf32>
    %170 = vector.shape_cast %169 : vector<1x72x192xf32> to vector<72x192xf32>
    %cst_187 = arith.constant dense<0.000000e+00> : vector<4x192xf32>
    %171 = tpu.matmul %168, %170, %cst_187 {dimension_numbers = #tpu.dot_dimension_numbers<[1], [0], [0], [1], [0, 0, 1, 1], [], []>} : vector<4x72xf32>, vector<72x192xf32>, vector<4x192xf32> -> vector<4x192xf32>
    %172 = arith.addf %167, %171 : vector<4x192xf32>
    %173 = vector.extract_strided_slice %137 {offsets = [1, 0], sizes = [4, 72], strides = [1, 1]} : vector<6x72xf32> to vector<4x72xf32>
    %c1_188 = arith.constant 1 : index
    %c0_189 = arith.constant 0 : index
    %c0_190 = arith.constant 0 : index
    %174 = vector.load %arg4[%c1_188, %c0_189, %c0_190] : memref<5x72x192xf32, #tpu.memory_space<vmem>>, vector<1x72x192xf32>
    %175 = vector.shape_cast %174 : vector<1x72x192xf32> to vector<72x192xf32>
    %cst_191 = arith.constant dense<0.000000e+00> : vector<4x192xf32>
    %176 = tpu.matmul %173, %175, %cst_191 {dimension_numbers = #tpu.dot_dimension_numbers<[1], [0], [0], [1], [0, 0, 1, 1], [], []>} : vector<4x72xf32>, vector<72x192xf32>, vector<4x192xf32> -> vector<4x192xf32>
    %177 = arith.addf %172, %176 : vector<4x192xf32>
    %178 = vector.extract_strided_slice %140 {offsets = [1, 0], sizes = [4, 72], strides = [1, 1]} : vector<6x72xf32> to vector<4x72xf32>
    %c2_192 = arith.constant 2 : index
    %c0_193 = arith.constant 0 : index
    %c0_194 = arith.constant 0 : index
    %179 = vector.load %arg4[%c2_192, %c0_193, %c0_194] : memref<5x72x192xf32, #tpu.memory_space<vmem>>, vector<1x72x192xf32>
    %180 = vector.shape_cast %179 : vector<1x72x192xf32> to vector<72x192xf32>
    %cst_195 = arith.constant dense<0.000000e+00> : vector<4x192xf32>
    %181 = tpu.matmul %178, %180, %cst_195 {dimension_numbers = #tpu.dot_dimension_numbers<[1], [0], [0], [1], [0, 0, 1, 1], [], []>} : vector<4x72xf32>, vector<72x192xf32>, vector<4x192xf32> -> vector<4x192xf32>
    %182 = arith.addf %177, %181 : vector<4x192xf32>
    %183 = vector.extract_strided_slice %137 {offsets = [2, 0], sizes = [4, 72], strides = [1, 1]} : vector<6x72xf32> to vector<4x72xf32>
    %c3_196 = arith.constant 3 : index
    %c0_197 = arith.constant 0 : index
    %c0_198 = arith.constant 0 : index
    %184 = vector.load %arg4[%c3_196, %c0_197, %c0_198] : memref<5x72x192xf32, #tpu.memory_space<vmem>>, vector<1x72x192xf32>
    %185 = vector.shape_cast %184 : vector<1x72x192xf32> to vector<72x192xf32>
    %cst_199 = arith.constant dense<0.000000e+00> : vector<4x192xf32>
    %186 = tpu.matmul %183, %185, %cst_199 {dimension_numbers = #tpu.dot_dimension_numbers<[1], [0], [0], [1], [0, 0, 1, 1], [], []>} : vector<4x72xf32>, vector<72x192xf32>, vector<4x192xf32> -> vector<4x192xf32>
    %187 = arith.addf %182, %186 : vector<4x192xf32>
    %188 = vector.extract_strided_slice %140 {offsets = [2, 0], sizes = [4, 72], strides = [1, 1]} : vector<6x72xf32> to vector<4x72xf32>
    %c4_200 = arith.constant 4 : index
    %c0_201 = arith.constant 0 : index
    %c0_202 = arith.constant 0 : index
    %189 = vector.load %arg4[%c4_200, %c0_201, %c0_202] : memref<5x72x192xf32, #tpu.memory_space<vmem>>, vector<1x72x192xf32>
    %190 = vector.shape_cast %189 : vector<1x72x192xf32> to vector<72x192xf32>
    %cst_203 = arith.constant dense<0.000000e+00> : vector<4x192xf32>
    %191 = tpu.matmul %188, %190, %cst_203 {dimension_numbers = #tpu.dot_dimension_numbers<[1], [0], [0], [1], [0, 0, 1, 1], [], []>} : vector<4x72xf32>, vector<72x192xf32>, vector<4x192xf32> -> vector<4x192xf32>
    %192 = arith.addf %187, %191 : vector<4x192xf32>
    %c0_204 = arith.constant 0 : index
    %c0_205 = arith.constant 0 : index
    %193 = vector.load %arg5[%c0_204, %c0_205] : memref<1x64xf32, #tpu.memory_space<vmem>>, vector<1x64xf32>
    %194 = vector.extract_strided_slice %166 {offsets = [0, 0], sizes = [4, 64], strides = [1, 1]} : vector<4x192xf32> to vector<4x64xf32>
    %195 = vector.extract_strided_slice %166 {offsets = [0, 128], sizes = [4, 64], strides = [1, 1]} : vector<4x192xf32> to vector<4x64xf32>
    %196 = arith.maximumf %194, %195 : vector<4x64xf32>
    %197 = vector.extract_strided_slice %192 {offsets = [0, 0], sizes = [4, 64], strides = [1, 1]} : vector<4x192xf32> to vector<4x64xf32>
    %198 = vector.extract_strided_slice %192 {offsets = [0, 128], sizes = [4, 64], strides = [1, 1]} : vector<4x192xf32> to vector<4x64xf32>
    %199 = arith.maximumf %197, %198 : vector<4x64xf32>
    %200 = arith.maximumf %196, %199 : vector<4x64xf32>
    %201 = vector.broadcast %193 : vector<1x64xf32> to vector<4x64xf32>
    %202 = arith.addf %201, %200 : vector<4x64xf32>
    %cst_206 = arith.constant 0.000000e+00 : f32
    %203 = vector.broadcast %cst_206 : f32 to vector<4x64xf32>
    %204 = arith.maximumf %202, %203 : vector<4x64xf32>
    %c0_207 = arith.constant 0 : index
    %c0_208 = arith.constant 0 : index
    %205 = vector.load %arg6[%c0_207, %c0_208] : memref<64x512xf32, #tpu.memory_space<vmem>>, vector<64x512xf32>
    %cst_209 = arith.constant dense<0.000000e+00> : vector<4x512xf32>
    %206 = tpu.matmul %204, %205, %cst_209 {dimension_numbers = #tpu.dot_dimension_numbers<[1], [0], [0], [1], [0, 0, 1, 1], [], []>} : vector<4x64xf32>, vector<64x512xf32>, vector<4x512xf32> -> vector<4x512xf32>
    %c0_210 = arith.constant 0 : index
    %c0_211 = arith.constant 0 : index
    %207 = vector.load %arg7[%c0_210, %c0_211] : memref<1x128xf32, #tpu.memory_space<vmem>>, vector<1x128xf32>
    %208 = vector.extract_strided_slice %206 {offsets = [0, 0], sizes = [1, 128], strides = [1, 1]} : vector<4x512xf32> to vector<1x128xf32>
    %209 = arith.addf %207, %208 : vector<1x128xf32>
    %210 = vector.extract_strided_slice %206 {offsets = [1, 128], sizes = [1, 128], strides = [1, 1]} : vector<4x512xf32> to vector<1x128xf32>
    %211 = arith.addf %209, %210 : vector<1x128xf32>
    %212 = vector.extract_strided_slice %206 {offsets = [2, 256], sizes = [1, 128], strides = [1, 1]} : vector<4x512xf32> to vector<1x128xf32>
    %213 = arith.addf %211, %212 : vector<1x128xf32>
    %214 = vector.extract_strided_slice %206 {offsets = [3, 384], sizes = [1, 128], strides = [1, 1]} : vector<4x512xf32> to vector<1x128xf32>
    %215 = arith.addf %213, %214 : vector<1x128xf32>
    %cst_212 = arith.constant 0.000000e+00 : f32
    %216 = vector.broadcast %cst_212 : f32 to vector<1x128xf32>
    %217 = arith.maximumf %215, %216 : vector<1x128xf32>
    %c0_213 = arith.constant 0 : index
    %c0_214 = arith.constant 0 : index
    %218 = vector.load %arg8[%c0_213, %c0_214] : memref<128x128xf32, #tpu.memory_space<vmem>>, vector<128x128xf32>
    %cst_215 = arith.constant dense<0.000000e+00> : vector<1x128xf32>
    %219 = tpu.matmul %217, %218, %cst_215 {dimension_numbers = #tpu.dot_dimension_numbers<[1], [0], [0], [1], [0, 0, 1, 1], [], []>} : vector<1x128xf32>, vector<128x128xf32>, vector<1x128xf32> -> vector<1x128xf32>
    %c0_216 = arith.constant 0 : index
    %c0_217 = arith.constant 0 : index
    %220 = vector.load %arg9[%c0_216, %c0_217] : memref<1x128xf32, #tpu.memory_space<vmem>>, vector<1x128xf32>
    %221 = arith.addf %219, %220 : vector<1x128xf32>
    %c0_218 = arith.constant 0 : index
    %c0_219 = arith.constant 0 : index
    %c0_220 = arith.constant 0 : index
    %222 = vector.load %arg10[%c0_218, %c0_219, %c0_220] : memref<1x1x128xf32, #tpu.memory_space<vmem>>, vector<1x1x128xf32>
    %223 = vector.shape_cast %222 : vector<1x1x128xf32> to vector<1x128xf32>
    %224 = vector.shape_cast %221 : vector<1x128xf32> to vector<1x1x128xf32>
    tpu.vector_store %arg10[%c0_218, %c0_219, %c0_220], %224 {strides = array<i32>} : memref<1x1x128xf32, #tpu.memory_space<vmem>>, vector<1x1x128xf32>,
    return
  }
  func.func @transform_0(%arg0: i32) -> (i32, i32, i32, i32) {
    %c0_i32 = arith.constant 0 : i32
    %c0_i32_0 = arith.constant 0 : i32
    %c0_i32_1 = arith.constant 0 : i32
    %c0_i32_2 = arith.constant 0 : i32
    return %arg0, %c0_i32, %c0_i32_0, %c0_i32_1 : i32, i32, i32, i32
  }
  func.func @transform_1(%arg0: i32) -> (i32, i32, i32) {
    %c0_i32 = arith.constant 0 : i32
    %c0_i32_0 = arith.constant 0 : i32
    %c0_i32_1 = arith.constant 0 : i32
    %c0_i32_2 = arith.constant 0 : i32
    return %c0_i32, %c0_i32_0, %c0_i32_1 : i32, i32, i32
  }
  func.func @transform_2(%arg0: i32) -> (i32, i32) {
    %c0_i32 = arith.constant 0 : i32
    %c0_i32_0 = arith.constant 0 : i32
    %c0_i32_1 = arith.constant 0 : i32
    return %c0_i32, %c0_i32_0 : i32, i32
  }
  func.func @transform_3(%arg0: i32) -> (i32, i32, i32) {
    %c0_i32 = arith.constant 0 : i32
    %c0_i32_0 = arith.constant 0 : i32
    %c0_i32_1 = arith.constant 0 : i32
    %c0_i32_2 = arith.constant 0 : i32
    return %c0_i32, %c0_i32_0, %c0_i32_1 : i32, i32, i32
  }
  func.func @transform_4(%arg0: i32) -> (i32, i32) {
    %c0_i32 = arith.constant 0 : i32
    %c0_i32_0 = arith.constant 0 : i32
    %c0_i32_1 = arith.constant 0 : i32
    return %c0_i32, %c0_i32_0 : i32, i32
  }
  func.func @transform_5(%arg0: i32) -> (i32, i32) {
    %c0_i32 = arith.constant 0 : i32
    %c0_i32_0 = arith.constant 0 : i32
    %c0_i32_1 = arith.constant 0 : i32
    return %c0_i32, %c0_i32_0 : i32, i32
  }
  func.func @transform_6(%arg0: i32) -> (i32, i32) {
    %c0_i32 = arith.constant 0 : i32
    %c0_i32_0 = arith.constant 0 : i32
    %c0_i32_1 = arith.constant 0 : i32
    return %c0_i32, %c0_i32_0 : i32, i32
  }
  func.func @transform_7(%arg0: i32) -> (i32, i32) {
    %c0_i32 = arith.constant 0 : i32
    %c0_i32_0 = arith.constant 0 : i32
    %c0_i32_1 = arith.constant 0 : i32
    return %c0_i32, %c0_i32_0 : i32, i32
  }
  func.func @transform_8(%arg0: i32) -> (i32, i32) {
    %c0_i32 = arith.constant 0 : i32
    %c0_i32_0 = arith.constant 0 : i32
    %c0_i32_1 = arith.constant 0 : i32
    return %c0_i32, %c0_i32_0 : i32, i32
  }
  func.func @transform_9(%arg0: i32) -> (i32, i32, i32) {
    %c0_i32 = arith.constant 0 : i32
    %c0_i32_0 = arith.constant 0 : i32
    %c0_i32_1 = arith.constant 0 : i32
    return %arg0, %c0_i32, %c0_i32_0 : i32, i32, i32
  }
}

</mosaic_0001>

<bundles_post_ra>
// kernel: lenet5_forward.1
= control target key start
LH: loop header
LB: loop body
LE: loop exit
PB: predicated region body
PF: predicated region fallthrough
CT: control target
= control target key end

     0   :  { %14 = vsyncpa [#allocation3], 0  ;;  %s4736_s0 = inlined_call_operand.vmem [shape: f32[2,4,7,28], index: 0, kind: input, shape index: {}]   ;;  %s4737_s1 = inlined_call_operand.hbm [shape: f32[5,28,200], index: 1, kind: input, shape index: {}]   ;;  %s4738_s2 = inlined_call_operand.vmem [shape: f32[1,200], index: 2, kind: input, shape index: {}]   ;;  %s4739_s3 = inlined_call_operand.hbm [shape: f32[5,72,192], index: 3, kind: input, shape index: {}]   ;;  %s4740_s4 = inlined_call_operand.vmem [shape: f32[1,64], index: 4, kind: input, shape index: {}]   ;;  %s4741_s5 = inlined_call_operand.hbm [shape: f32[64,512], index: 5, kind: input, shape index: {}]   ;;  %s4742_s6 = inlined_call_operand.vmem [shape: f32[1,128], index: 6, kind: input, shape index: {}]   ;;  %s4743_s7 = inlined_call_operand.vmem [shape: f32[128,128], index: 7, kind: input, shape index: {}]   ;;  %s4744_s8 = inlined_call_operand.vmem [shape: f32[1,128], index: 8, kind: input, shape index: {}]   ;;  %s4745_s9 = inlined_call_operand.hbm [shape: f32[2,1,128], index: 9, kind: output, shape index: {}]  }
   0x1   :  { %15 = vsyncpa [#allocation6], 0 }
   0x2   :  { %16 = vsyncpa [#allocation4], 0 }
   0x3   :  { %18 = vsyncpa [#allocation4 + $0x1], 0  ;;  %s4134_s30 = smov 0   ;;  %s4136_s10 = smov 0  }
   0x4   :  { %s4138_s11 = smov 0   ;;  %s4140_s12 = smov 0  }
   0x5 LB: > { %4754 = sst [smem:[#allocation12_spill]] %s4057_s30  ;;  %s4155_s13 = sadd.s32 4294967295, %s4069_s12   ;;  %s4069_s12 = sphi %s4140_s12, %s4775_s12   ;;  %s4065_s11 = sphi %s4138_s11, %s4777_s11   ;;  %s4061_s10 = sphi %s4136_s10, %s4779_s10   ;;  %s4057_s30 = sphi %s4134_s30, %s4778_s30  }
   0x6   : > { %4755 = sst [smem:[#allocation13_spill]] %s4065_s11  ;;  %s3225_s14 = sadd.s32 4294967294, %s4069_s12  }
   0x7   : > { %s4159_s15 = sadd.s32 1, %s4069_s12   ;;  %s225_s16 = sadd.s32 1, %s4065_s11 }
   0x8   : > { %4756 = sst [smem:[#allocation14_spill]] %s4159_s15  ;;  %s222_s17 = ssub.s32 %s4069_s12, %s4159_s15 }
   0x9   : > { %p235_p0 = scmp.ne.s32.totalorder %s4065_s11, %s4061_s10  ;;  %p223_p1 = scmp.eq.s32.totalorder %s222_s17, 0 }
   0xa   : > { %p236_p2 = scmp.eq.s32.totalorder %s4155_s13, 1  ;;  %p241_p3 = scmp.ne.s32.totalorder %s4061_s10, %s4057_s30 }
   0xb   : > { %p242_p4 = scmp.eq.s32.totalorder %s3225_s14, 1  ;;  %p3226_p7 = scmp.ge.s32.totalorder %s4069_s12, 1 }
   0xc   : > { %s4170_s18 = scalar_select %p223_p1, %s4065_s11, %s225_s16  }
   0xd   : > { %p4172_p5 = por %p236_p2, %p235_p0  ;;  %p4176_p6 = por %p242_p4, %p241_p3 }
   0xe   : > { %4757 = sst [smem:[#allocation15_spill]] %s4170_s18  ;;  %p249_p8 = scmp.lt.s32.totalorder %s4069_s12, 3 }
   0xf   : > { %s4758_s19 = scalar_select %p4172_p5, 1, 0 }
  0x10   : > { %s4759_s20 = scalar_select %p4176_p6, 1, 0 }
  0x11   : > { %p4746_p9 = scmp.eq.s32.totalorder %s4155_s13, 0  ;;  %p4183_p10 = pnand %p3226_p7, %p249_p8 }
  0x12   : > { %4760 = sst [smem:[#allocation16_spill]] %s4759_s20  ;;  %s4071_s22 = smov [#allocation5]  }
  0x13   : > { %s4761_s21 = scalar_select %p4183_p10, 1, 0 }
  0x14   : > { %p3850_p11 = pneg %p4183_p10  ;;  %s277_s23 = sshll.u32 %s4071_s22, 4  ;;  %s4189_s23 = int_to_ptr.vmem [resolvable:$true] %s277_s23 }
  0x15   : > { %s4072_s25 = smov [#allocation2]   ;;  %s4073_s27 = smov [#allocation7]  }
  0x16   : > { %p4193_p12 = pnand %p4746_p9, %p3850_p11  ;;  %s261_s26 = sshll.u32 %s4072_s25, 4  ;;  %s4197_s26 = int_to_ptr.vmem [resolvable:$true] %s261_s26 }
  0x17   : > { %s4199_s28 = sshll.u32 %s4073_s27, 4  ;;  %s3915_s16 = scalar_lea.hbm %s4739_s3, 11520  ;;  %s294_s28 = int_to_ptr.vmem [resolvable:$true] %s4199_s28 }
  0x18   : > { %p3916_p13 = scmp.ne.s32.totalorder %s4739_s3, %s3915_s16  ;;  %p4209_p0 = pneg %p4193_p12 }
  0x19   : > { %p3922_p3 = scmp.lt.u32.totalorder %s3915_s16, %s4739_s3 }
  0x1a   : > { %p3918_p1 = pnand %p4209_p0, %p3916_p13 }
  0x1c   : > { %p3919_p2 = pneg %p3918_p1 }
  0x1e   : > { %p3924_p4 = pnand %p3922_p3, %p3919_p2 }
  0x20   : > { %3927 = shalt.err (!%p3924_p4)
}
  0x21   : > { %s3928_s29 = scalar_lea.vmem %s4189_s23, 11520  ;;  %p3936_p9 = scmp.lt.s32.totalorder %s4189_s23, %s4189_s23 }
  0x22   : > { %p3929_p7 = scmp.ne.s32.totalorder %s4189_s23, %s3928_s29  ;;  %p3937_p6 = scmp.lt.s32.totalorder %s3928_s29, %s3928_s29 }
  0x24   : > { %p3931_p8 = pnand %p3929_p7, %p4209_p0  ;;  %p3938_p13 = por %p3937_p6, %p3936_p9 }
  0x26   : > { %p3932_p11 = pneg %p3931_p8 }
  0x28   : > { %p3939_p1 = pnand %p3938_p13, %p3932_p11 }
  0x2a   : > { %3942 = shalt.err (!%p3939_p1)
}
  0x2b   : > { %s4074_s14 = smov 256   ;;  %s4075_s16 = smov 16  }
  0x2c   : > { %3856 = dma.hbm_to_vmem [thread:$0]  (!%p4193_p12), %s4739_s3, 11520, %s4189_s23, [#allocation6], %s4074_s14, %s4074_s14, %s4075_s16  }
  0x2d   : > { %s3943_s11 = scalar_lea.hbm %s4737_s1, 5120 }
  0x2e   : > { %p3944_p6 = scmp.ne.s32.totalorder %s4737_s1, %s3943_s11  ;;  %p3950_p3 = scmp.lt.u32.totalorder %s3943_s11, %s4737_s1 }
  0x30   : > { %p3946_p9 = pnand %p3944_p6, %p4209_p0 }
  0x32   : > { %p3947_p2 = pneg %p3946_p9 }
  0x34   : > { %p3952_p4 = pnand %p3950_p3, %p3947_p2 }
  0x36   : > { %3955 = shalt.err (!%p3952_p4)
}
  0x37   : > { %s3956_s23 = scalar_lea.vmem %s4197_s26, 5120  ;;  %p3964_p13 = scmp.lt.s32.totalorder %s4197_s26, %s4197_s26 }
  0x38   : > { %p3957_p7 = scmp.ne.s32.totalorder %s4197_s26, %s3956_s23  ;;  %p3965_p1 = scmp.lt.s32.totalorder %s3956_s23, %s3956_s23 }
  0x3a   : > { %p3959_p8 = pnand %p3957_p7, %p4209_p0  ;;  %p3966_p6 = por %p3965_p1, %p3964_p13 }
  0x3c   : > { %p3960_p11 = pneg %p3959_p8 }
  0x3e   : > { %p3967_p9 = pnand %p3966_p6, %p3960_p11 }
  0x40   : > { %3970 = shalt.err (!%p3967_p9)
}
  0x41   : > { %3853 = dma.hbm_to_vmem [thread:$0]  (!%p4193_p12), %s4737_s1, 5120, %s4197_s26, [#allocation3], %s4074_s14, %s4074_s14, %s4075_s16  }
  0x42   : > { %s3971_s17 = scalar_lea.hbm %s4741_s5, 4096 }
  0x43   : > { %p3972_p2 = scmp.ne.s32.totalorder %s4741_s5, %s3971_s17  ;;  %p3978_p7 = scmp.lt.u32.totalorder %s3971_s17, %s4741_s5 }
  0x45   : > { %p3974_p3 = pnand %p3972_p2, %p4209_p0 }
  0x47   : > { %p3975_p4 = pneg %p3974_p3 }
  0x49   : > { %p3980_p8 = pnand %p3978_p7, %p3975_p4 }
  0x4b   : > { %3983 = shalt.err (!%p3980_p8)
}
  0x4c   : > { %s3984_s23 = scalar_lea.vmem %s294_s28, 4096  ;;  %p3992_p6 = scmp.lt.s32.totalorder %s294_s28, %s294_s28 }
  0x4d   : > { %p3985_p11 = scmp.ne.s32.totalorder %s294_s28, %s3984_s23  ;;  %p3993_p9 = scmp.lt.s32.totalorder %s3984_s23, %s3984_s23 }
  0x4f   : > { %p3987_p13 = pnand %p3985_p11, %p4209_p0  ;;  %p3994_p5 = por %p3993_p9, %p3992_p6 }
  0x51   : > { %p3988_p1 = pneg %p3987_p13 }
  0x53   : > { %p3995_p10 = pnand %p3994_p5, %p3988_p1 }
  0x55   : > { %3998 = shalt.err (!%p3995_p10)
}
  0x56   : > { %s4076_s26 = smov 512   ;;  %s4077_s14 = smov 32  }
  0x57   : > { %3859 = dma.hbm_to_vmem [thread:$0]  (!%p4193_p12), %s4741_s5, 4096, %s294_s28, [#allocation6], %s4076_s26, %s4076_s26, %s4077_s14  }
  0x58   : > { %p4764_p2 = scmp.ne.s32.totalorder %s4761_s21, 0 }
  0x59   : > { %p4765_p3 = scmp.eq.s32.totalorder (!%p4764_p2), %s4155_s13, 0 }
  0x5a   : > { %326 = sbr.rel (%p4764_p2) target bundleno = 1171 (0x493), region = 56 }
  0x61   : > { %4044 = dma.done.wait (%p4765_p3), [#allocation3], 5120   ;;  %p4766_p0 = pmov %p4765_p3 }
  0x63   : > { %4046 = vsyncadd (%p4766_p0), [#allocation3], 4294962176  ;;  %p4767_p5 = pmov %p4766_p0 }
  0x64   : > { %p4768_p10 = pmov %p4766_p0 }
  0x65   : > { %4048 = dma.done.wait (%p4767_p5), [#allocation6], 15616  }
  0x66   : > { %4050 = vsyncadd (%p4768_p10), [#allocation6], 4294951680  ;;  %v4078_v0 = vmov 0.0   ;;  %p369_p12 = scmp.lt.s32.totalorder %s4155_s13, 1  ;;  %vm398_vm0 = vcmask 1043456   ;;  %v387_v1 = vld [vmem:[#allocation2 + $0x48] sm:$0xff] }
  0x67   : > { %469 = vmatprep.mubr.f32.mxu0 %v4078_v0  ;;  %898 = vmatprep.mubr.f32.mxu1 %v4078_v0  ;;  %v389_v2 = vld [vmem:[#allocation2 + $0x58] sm:$0xff]  ;;  %v386_v3 = vld [vmem:[#allocation2 + $0x40] sm:$0xff]  ;;  %v388_v5 = vld [vmem:[#allocation2 + $0x50] sm:$0xff]  ;;  %vm4079_vm1 = vmmov 1   ;;  %vm394_vm3 = vcmask 228352   ;;  %vm1992_vm4 = vcmask 588800  }
  0x68   : > { %s370_s18 = scalar_select %p369_p12, %s4155_s13, 1  ;;  %v4286_v4 = vpack.c.bf16 %v389_v2, %v387_v1  ;;  %v391_v6 = vld [vmem:[#allocation2 + $0x68] sm:$0xff]  ;;  %v393_v7 = vld [vmem:[#allocation2 + $0x78] sm:$0xf]  ;;  %v4288_v8 = vpack.c.bf16 %v388_v5, %v386_v3  ;;  %vm4292_vm2 = vmpackc.low %vm398_vm0, %vm4079_vm1  ;;  %vm2834_vm5 = vcmask 523264   ;;  %vm4081_vm6 = vmmov 0  }
  0x69   : > { %v4290_v9 = vpack.c.bf16 %v393_v7, %v391_v6  ;;  %v390_v11 = vld [vmem:[#allocation2 + $0x60] sm:$0xff]  ;;  %v392_v12 = vld [vmem:[#allocation2 + $0x70] sm:$0xf]  ;;  %v376_v13 = vld [vmem:[#allocation2 + $0x8] sm:$0xff]  ;;  %s367_s25 = sand.u32 1, %s4061_s10   ;;  %s3316_s23 = sshll.u32 %s4155_s13, 4 }
  0x6a   : > { %s3319_s21 = sshll.u32 %s370_s18, 5  ;;  %3373 = vmatprep.subr.bf16.mxu0 %v4286_v4  ;;  %3423 = vmatprep.subr.bf16.mxu1 %v4286_v4  ;;  %v378_v14 = vld [vmem:[#allocation2 + $0x18] sm:$0xff]  ;;  %v4300_v15 = vpack.c.bf16 %v392_v12, %v390_v11  ;;  %v375_v17 = vld [vmem:[#allocation2] sm:$0xff]  ;;  %v377_v18 = vld [vmem:[#allocation2 + $0x10] sm:$0xff]  ;;  %s368_s26 = scalar_lea.vmem [#allocation8], %s367_s25 }
  0x6b   : > { %3375 = vmatpush1.bf16.msra.mxu0 %v4288_v8  ;;  %3425 = vmatpush1.bf16.msra.mxu1 %v4288_v8  ;;  %s4311_s11 = scalar_lea.vmem %s4736_s0, %s3319_s21  ;;  %v4313_v16 = vpack.c.bf16 %v378_v14, %v376_v13  ;;  %v380_v19 = vld [vmem:[#allocation2 + $0x28] sm:$0xff]  ;;  %v382_v20 = vld [vmem:[#allocation2 + $0x38] sm:$0xf]  ;;  %v4325_v23 = vpack.c.bf16 %v377_v18, %v375_v17  ;;  %v379_v25 = vld [vmem:[#allocation2 + $0x20] sm:$0xff]  ;;  %s3139_s14 = sshll.u32 %s368_s26, 4  ;;  %s4696_s14 = int_to_ptr.vmem [resolvable:$true] %s3139_s14 }
  0x6c   : > { %3378 = vmatprep.subr.msk.bf16.mxu0 %vm4292_vm2, %v4290_v9  ;;  %3428 = vmatprep.subr.msk.bf16.mxu1 %vm4292_vm2, %v4290_v9  ;;  %v3237_v21 = vld [vmem:[%s4311_s11 + $0x8] sm:$0x3f]  ;;  %v4323_v22 = vld [vmem:[%s4311_s11 + $0x10] sm:$0x3f]  ;;  %v4329_v24 = vpack.c.bf16 %v382_v20, %v380_v19  ;;  %v562_v28 = vld [vmem:[#allocation2 + $0x98] sm:$0xff]  ;;  %s4694_s18 = scalar_lea.hbm %s4745_s9, %s3316_s23  ;;  %s3127_s21 = scalar_lea.sflag [#allocation4], %s367_s25 }
  0x6d   : > { %v381_v26 = vld [vmem:[#allocation2 + $0x30] sm:$0xf]  ;;  %v560_v27 = vld [vmem:[#allocation2 + $0x88] sm:$0xff]  ;;  %v559_v31 = vld [vmem:[#allocation2 + $0x80] sm:$0xff]  ;;  %s3999_s24 = scalar_lea.vmem %s4696_s14, 16  ;;  %p4771_p7 = scmp.ne.s32.totalorder %s4758_s19, 0 }
  0x6e   : > { %v4336_v29 = vpack.c.bf16 %v381_v26, %v379_v25  ;;  %v4344_v30 = vpack.c.bf16 %v562_v28, %v560_v27  ;;  %v561_v32 = vld [vmem:[#allocation2 + $0x90] sm:$0xff]  ;;  %v564_v33 = vld [vmem:[#allocation2 + $0xa8] sm:$0xff]  ;;  %v566_v34 = vld [vmem:[#allocation2 + $0xb8] sm:$0xf]  ;;  %p4000_p4 = scmp.ne.s32.totalorder %s4696_s14, %s3999_s24  ;;  %s4083_s13 = smov [#allocation8]  }
  0x6f   : > { %3381 = vmatpush1.bf16.msk.msra.mxu0 %vm4292_vm2, %v4300_v15  ;;  %3431 = vmatpush1.bf16.msk.msra.mxu1 %vm4292_vm2, %v4300_v15  ;;  %v374_v35 = vld [vmem:[%s4311_s11] sm:$0x3f]  ;;  %v4355_v36 = vpack.c.bf16 %v561_v32, %v559_v31  ;;  %v4359_v37 = vpack.c.bf16 %v566_v34, %v564_v33  ;;  %v565_v39 = vld [vmem:[#allocation2 + $0xb0] sm:$0xf]  ;;  %v653_v40 = vld [vmem:[#allocation2 + $0xc8] sm:$0xff]  ;;  %s4003_s28 = sshll.u32 %s4083_s13, 4  ;;  %s4004_s28 = int_to_ptr.vmem [resolvable:$false] %s4003_s28 }
  0x70   : > { %3383 = vmatprep.subr.bf16.mxu0 %v4313_v16  ;;  %3433 = vmatprep.subr.bf16.mxu1 %v4313_v16  ;;  %v563_v38 = vld [vmem:[#allocation2 + $0xa0] sm:$0xff]  ;;  %v655_v41 = vld [vmem:[#allocation2 + $0xd8] sm:$0xff]  ;;  %v654_v45 = vld [vmem:[#allocation2 + $0xd0] sm:$0xff]  ;;  %p4001_p8 = pnand %p4000_p4, %p4771_p7  ;;  %p4006_p13 = scmp.lt.s32.totalorder %s4696_s14, %s4004_s28 }
  0x71   : > { %v4365_v42 = vpack.c.bf16 %v565_v39, %v563_v38  ;;  %v4373_v43 = vpack.c.bf16 %v655_v41, %v653_v40  ;;  %v652_v44 = vld [vmem:[#allocation2 + $0xc0] sm:$0xff]  ;;  %v657_v46 = vld [vmem:[#allocation2 + $0xe8] sm:$0xff]  ;;  %v659_v47 = vld [vmem:[#allocation2 + $0xf8] sm:$0xf] }
  0x72   : > { %3240 = vmatmul.mubr.msk.f32.vlgmr.msra.gmra.mrb[0].mxu0 %vm394_vm3, %v3237_v21  ;;  %3257 = vmatmul.mubr.msk.f32.vlgmr.msra.gmra.mrb[0].mxu1 %vm394_vm3, %v4323_v22  ;;  %v4384_v48 = vld [vmem:[%s4311_s11 + $0x18] sm:$0x3f]  ;;  %v4386_v49 = vpack.c.bf16 %v654_v45, %v652_v44  ;;  %v4390_v50 = vpack.c.bf16 %v659_v47, %v657_v46  ;;  %v656_v51 = vld [vmem:[#allocation2 + $0xe0] sm:$0xff]  ;;  %v658_v52 = vld [vmem:[#allocation2 + $0xf0] sm:$0xf]  ;;  %p4002_p11 = pneg %p4001_p8 }
  0x73   : > { %3385 = vmatpush1.bf16.msra.mxu0 %v4325_v23  ;;  %3435 = vmatpush1.bf16.msra.mxu1 %v4325_v23  ;;  %v745_v53 = vld [vmem:[#allocation2 + $0x108] sm:$0xff]  ;;  %v747_v54 = vld [vmem:[#allocation2 + $0x118] sm:$0xff]  ;;  %v4398_v55 = vpack.c.bf16 %v658_v52, %v656_v51  ;;  %v744_v57 = vld [vmem:[#allocation2 + $0x100] sm:$0xff] }
  0x74   : > { %3388 = vmatprep.subr.msk.bf16.mxu0 %vm4292_vm2, %v4329_v24  ;;  %3438 = vmatprep.subr.msk.bf16.mxu1 %vm4292_vm2, %v4329_v24  ;;  %v4406_v56 = vpack.c.bf16 %v747_v54, %v745_v53  ;;  %v746_v58 = vld [vmem:[#allocation2 + $0x110] sm:$0xff]  ;;  %v749_v59 = vld [vmem:[#allocation2 + $0x128] sm:$0xff]  ;;  %v751_v60 = vld [vmem:[#allocation2 + $0x138] sm:$0xf] }
  0x75   : > { %549 = vmatprep.mubr.f32.mxu0 %v4078_v0  ;;  %969 = vmatprep.mubr.f32.mxu1 %v4078_v0  ;;  %v742_v61 = vld [vmem:[%s4311_s11 + $0x1] sm:$0x3f]  ;;  %v4417_v62 = vpack.c.bf16 %v746_v58, %v744_v57  ;;  %v4421_v63 = vpack.c.bf16 %v751_v60, %v749_v59  ;;  %v750_v2 = vld [vmem:[#allocation2 + $0x130] sm:$0xf]  ;;  %v3267_v5 = vld [vmem:[%s4311_s11 + $0x9] sm:$0x3f] }
  0x76   : > { %v748_v1 = vld [vmem:[#allocation2 + $0x120] sm:$0xff]  ;;  %v1975_v6 = vld [vmem:[#allocation5 + $0x98] sm:$0xff]  ;;  %v1977_v7 = vld [vmem:[#allocation5 + $0xa8] sm:$0xff] }
  0x77   : > { %3391 = vmatpush1.bf16.msk.msra.mxu0 %vm4292_vm2, %v4336_v29  ;;  %3441 = vmatpush1.bf16.msk.msra.mxu1 %vm4292_vm2, %v4336_v29  ;;  %v4428_v3 = vpack.c.bf16 %v750_v2, %v748_v1  ;;  %v1976_v11 = vld [vmem:[#allocation5 + $0xa0] sm:$0xff]  ;;  %v1979_v12 = vld [vmem:[#allocation5 + $0xb8] sm:$0xff]  ;;  %v1981_v13 = vld [vmem:[#allocation5 + $0xc8] sm:$0xff] }
  0x78   : > { %3393 = vmatprep.subr.bf16.mxu0 %v4344_v30  ;;  %3443 = vmatprep.subr.bf16.mxu1 %v4344_v30  ;;  %v3299_v14 = vld [vmem:[%s4311_s11 + $0x19] sm:$0x3f]  ;;  %v1978_v17 = vld [vmem:[#allocation5 + $0xb0] sm:$0xff]  ;;  %v1980_v18 = vld [vmem:[#allocation5 + $0xc0] sm:$0xff] }
  0x79   : > { %v3578_v19 = vpack.c.bf16 %v1980_v18, %v1978_v17  ;;  %v1983_v10 = vld [vmem:[#allocation5 + $0xd8] sm:$0xff]  ;;  %v1985_v20 = vld [vmem:[#allocation5 + $0xe8] sm:$0xff]  ;;  %v1986_v28 = vld [vmem:[#allocation5 + $0xf0] sm:$0xff] }
  0x7a   : > { %3243 = vmatmul.mubr.msk.f32.vlgmr.msra.gmra.mrb[0].mxu0 %vm394_vm3, %v374_v35  ;;  %3260 = vmatmul.mubr.msk.f32.vlgmr.msra.gmra.mrb[0].mxu1 %vm394_vm3, %v3237_v21  ;;  %v3580_v21 = vpack.c.bf16 %v1985_v20, %v1983_v10  ;;  %v1987_v25 = vld [vmem:[#allocation5 + $0xf8] sm:$0xff]  ;;  %v1989_v26 = vld [vmem:[#allocation5 + $0x108] sm:$0xff]  ;;  %v1990_v32 = vld [vmem:[#allocation5 + $0x110] sm:$0xff] }
  0x7b   : > { %3395 = vmatpush1.bf16.msra.mxu0 %v4355_v36  ;;  %3445 = vmatpush1.bf16.msra.mxu1 %v4355_v36  ;;  %v3584_v27 = vpack.c.bf16 %v1989_v26, %v1987_v25  ;;  %v1991_v31 = vld [vmem:[#allocation5 + $0x118] sm:$0xff]  ;;  %v1956_v33 = vld [vmem:[#allocation5 + $0x8] sm:$0xff]  ;;  %v1929_v39 = vld [vmem:[%s4738_s2] sm:$0x3] }
  0x7c   : > { %3398 = vmatprep.subr.msk.bf16.mxu0 %vm4292_vm2, %v4359_v37  ;;  %3448 = vmatprep.subr.msk.bf16.mxu1 %vm4292_vm2, %v4359_v37  ;;  %v1958_v34 = vld [vmem:[#allocation5 + $0x18] sm:$0xff]  ;;  %v1955_v53 = vld [vmem:[#allocation5] sm:$0xff]  ;;  %v1957_v54 = vld [vmem:[#allocation5 + $0x10] sm:$0xff] }
  0x7d   : > { %640 = vmatprep.mubr.f32.mxu0 %v4078_v0  ;;  %1040 = vmatprep.mubr.f32.mxu1 %v4078_v0  ;;  %v3588_v35 = vpack.c.bf16 %v1958_v34, %v1956_v33  ;;  %v3590_v58 = vpack.c.bf16 %v1957_v54, %v1955_v53  ;;  %v1966_v1 = vld [vmem:[#allocation5 + $0x58] sm:$0xff]  ;;  %v4571_v17 = vld [vmem:[#allocation5 + $0x80] sm:$0xff]  ;;  %v2240_v53 = vld [vmem:[#allocation5 + $0x1c8] sm:$0xff] }
  0x7e   : > { %v2142_v26 = vld [vmem:[#allocation5 + $0x120] sm:$0xff]  ;;  %v2237_v54 = vld [vmem:[#allocation5 + $0x1b0] sm:$0xff] }
  0x7f   : > { %3401 = vmatpush1.bf16.msk.msra.mxu0 %vm4292_vm2, %v4365_v42  ;;  %3451 = vmatpush1.bf16.msk.msra.mxu1 %vm4292_vm2, %v4365_v42 }
  0x80   : > { %3403 = vmatprep.subr.bf16.mxu0 %v4373_v43  ;;  %3453 = vmatprep.subr.bf16.mxu1 %v4373_v43 }
  0x82   : > { %3247 = vmatmul.mubr.msk.f32.vlgmr.msra.gmra.mrb[0].mxu0 %vm394_vm3, %v4323_v22  ;;  %3263 = vmatmul.mubr.msk.f32.vlgmr.msra.gmra.mrb[0].mxu1 %vm394_vm3, %v4384_v48 }
  0x83   : > { %3405 = vmatpush1.bf16.msra.mxu0 %v4386_v49  ;;  %3455 = vmatpush1.bf16.msra.mxu1 %v4386_v49 }
  0x84   : > { %3408 = vmatprep.subr.msk.bf16.mxu0 %vm4292_vm2, %v4390_v50  ;;  %3458 = vmatprep.subr.msk.bf16.mxu1 %vm4292_vm2, %v4390_v50 }
  0x85   : > { %733 = vmatprep.mubr.f32.mxu0 %v4078_v0  ;;  %1113 = vmatprep.mubr.f32.mxu1 %v4078_v0 }
  0x87   : > { %3411 = vmatpush1.bf16.msk.msra.mxu0 %vm4292_vm2, %v4398_v55  ;;  %3461 = vmatpush1.bf16.msk.msra.mxu1 %vm4292_vm2, %v4398_v55 }
  0x88   : > { %3413 = vmatprep.subr.bf16.mxu0 %v4406_v56  ;;  %3463 = vmatprep.subr.bf16.mxu1 %v4406_v56 }
  0x8a   : > { %3251 = vmatmul.mubr.msk.f32.vlgmr.msra.gmra.mrb[0].mxu0 %vm394_vm3, %v4384_v48  ;;  %3266 = vmatmul.mubr.msk.f32.vlgmr.msra.gmra.mrb[0].mxu1 %vm394_vm3, %v742_v61 }
  0x8b   : > { %3415 = vmatpush1.bf16.msra.mxu0 %v4417_v62  ;;  %3465 = vmatpush1.bf16.msra.mxu1 %v4417_v62 }
  0x8c   : > { %3418 = vmatprep.subr.msk.bf16.mxu0 %vm4292_vm2, %v4421_v63  ;;  %3468 = vmatprep.subr.msk.bf16.mxu1 %vm4292_vm2, %v4421_v63 }
  0x8d   : > { %825 = vmatprep.mubr.f32.mxu0 %v4078_v0  ;;  %1190 = vmatprep.mubr.f32.mxu1 %v4078_v0 }
  0x8f   : > { %3421 = vmatpush1.bf16.msk.msra.mxu0 %vm4292_vm2, %v4428_v3  ;;  %3471 = vmatpush1.bf16.msk.msra.mxu1 %vm4292_vm2, %v4428_v3 }
  0x90   : > { %3473 = vmatprep.subr.bf16.mxu0 %v4286_v4  ;;  %3523 = vmatprep.subr.bf16.mxu1 %v4286_v4  ;;  %v3283_v4 = vld [vmem:[%s4311_s11 + $0x11] sm:$0x3f]  ;;  %s4005_s11 = scalar_lea.vmem %s4004_s28, 32 }
  0x91   : > { %p4007_p1 = scmp.lt.s32.totalorder %s4005_s11, %s3999_s24 }
  0x92   : > { %3254 = vmatmul.mubr.msk.f32.vlgmr.msra.gmra.mrb[0].mxu0 %vm394_vm3, %v742_v61  ;;  %3270 = vmatmul.mubr.msk.f32.vlgmr.msra.gmra.mrb[0].mxu1 %vm394_vm3, %v3267_v5 }
  0x93   : > { %3475 = vmatpush1.bf16.msra.mxu0 %v4288_v8  ;;  %3525 = vmatpush1.bf16.msra.mxu1 %v4288_v8  ;;  %v3572_v8 = vpack.c.bf16 %v1977_v7, %v1975_v6  ;;  %v1968_v6 = vld [vmem:[#allocation5 + $0x68] sm:$0xff]  ;;  %v1970_v7 = vld [vmem:[#allocation5 + $0x78] sm:$0xff]  ;;  %p4008_p6 = por %p4007_p1, %p4006_p13 }
  0x94   : > { %3478 = vmatprep.subr.msk.bf16.mxu0 %vm4292_vm2, %v4290_v9  ;;  %3528 = vmatprep.subr.msk.bf16.mxu1 %vm4292_vm2, %v4290_v9  ;;  %v1974_v9 = vld [vmem:[#allocation5 + $0x90] sm:$0xff] }
  0x95   : > { %1263 = vmatprep.mubr.f32.mxu0 %v4078_v0  ;;  %1628 = vmatprep.mubr.f32.mxu1 %v4078_v0  ;;  %p4009_p9 = pnand %p4008_p6, %p4002_p11 }
  0x97   : > { %3481 = vmatpush1.bf16.msk.msra.mxu0 %vm4292_vm2, %v4300_v15  ;;  %3531 = vmatpush1.bf16.msk.msra.mxu1 %vm4292_vm2, %v4300_v15  ;;  %v3574_v15 = vpack.c.bf16 %v1976_v11, %v1974_v9  ;;  %v3600_v9 = vpack.c.bf16 %v1970_v7, %v1968_v6  ;;  %v1967_v11 = vld [vmem:[#allocation5 + $0x60] sm:$0xff] }
  0x98   : > { %3483 = vmatprep.subr.bf16.mxu0 %v4313_v16  ;;  %3533 = vmatprep.subr.bf16.mxu1 %v4313_v16  ;;  %v3576_v16 = vpack.c.bf16 %v1981_v13, %v1979_v12  ;;  %v1969_v12 = vld [vmem:[#allocation5 + $0x70] sm:$0xff] }
  0x99   : > { %v3602_v13 = vpack.c.bf16 %v1969_v12, %v1967_v11  ;;  %v2250_v11 = vld [vmem:[#allocation5 + $0x218] sm:$0xff]  ;;  %v2252_v12 = vld [vmem:[#allocation5 + $0x228] sm:$0xff] }
  0x9a   : > { %3273 = vmatmul.mubr.msk.f32.vlgmr.msra.gmra.mrb[2].mxu0 %vm394_vm3, %v4384_v48  ;;  %3289 = vmatmul.mubr.msk.f32.vlgmr.msra.gmra.mrb[2].mxu1 %vm394_vm3, %v742_v61 }
  0x9b   : > { %3485 = vmatpush1.bf16.msra.mxu0 %v4325_v23  ;;  %3535 = vmatpush1.bf16.msra.mxu1 %v4325_v23  ;;  %v1984_v23 = vld [vmem:[#allocation5 + $0xe0] sm:$0xff] }
  0x9c   : > { %3488 = vmatprep.subr.msk.bf16.mxu0 %vm4292_vm2, %v4329_v24  ;;  %3538 = vmatprep.subr.msk.bf16.mxu1 %vm4292_vm2, %v4329_v24 }
  0x9d   : > { %1334 = vmatprep.mubr.f32.mxu0 %v4078_v0  ;;  %1699 = vmatprep.mubr.f32.mxu1 %v4078_v0 }
  0x9f   : > { %3491 = vmatpush1.bf16.msk.msra.mxu0 %vm4292_vm2, %v4336_v29  ;;  %3541 = vmatpush1.bf16.msk.msra.mxu1 %vm4292_vm2, %v4336_v29  ;;  %v1988_v29 = vld [vmem:[#allocation5 + $0x100] sm:$0xff] }
  0xa0   : > { %3493 = vmatprep.subr.bf16.mxu0 %v4344_v30  ;;  %3543 = vmatprep.subr.bf16.mxu1 %v4344_v30  ;;  %v3586_v30 = vpack.c.bf16 %v1988_v29, %v1986_v28  ;;  %v2147_v29 = vld [vmem:[#allocation5 + $0x148] sm:$0xff] }
  0xa2   : > { %3276 = vmatmul.mubr.msk.f32.vlgmr.msra.gmra.mrb[2].mxu0 %vm394_vm3, %v4323_v22  ;;  %3292 = vmatmul.mubr.msk.f32.vlgmr.msra.gmra.mrb[2].mxu1 %vm394_vm3, %v4384_v48  ;;  %v1982_v22 = vld [vmem:[#allocation5 + $0xd0] sm:$0xff] }
  0xa3   : > { %3495 = vmatpush1.bf16.msra.mxu0 %v4355_v36  ;;  %3545 = vmatpush1.bf16.msra.mxu1 %v4355_v36  ;;  %v3582_v24 = vpack.c.bf16 %v1984_v23, %v1982_v22  ;;  %v1933_v36 = vlaneseq }
  0xa4   : > { %3498 = vmatprep.subr.msk.bf16.mxu0 %vm4292_vm2, %v4359_v37  ;;  %3548 = vmatprep.subr.msk.bf16.mxu1 %vm4292_vm2, %v4359_v37 }
  0xa5   : > { %1405 = vmatprep.mubr.f32.mxu0 %v4078_v0  ;;  %1770 = vmatprep.mubr.f32.mxu1 %v4078_v0  ;;  %v4554_v37 = vshrl.u32 %v1933_v36, 7  ;;  %v2148_v36 = vld [vmem:[#allocation5 + $0x150] sm:$0xff] }
  0xa7   : > { %3501 = vmatpush1.bf16.msk.msra.mxu0 %vm4292_vm2, %v4365_v42  ;;  %3551 = vmatpush1.bf16.msk.msra.mxu1 %vm4292_vm2, %v4365_v42  ;;  %v1935_v38 = vsub.s32 0, %v4554_v37  ;;  %v1939_v40 = vsub.s32 1, %v4554_v37 }
  0xa8   : > { %3503 = vmatprep.subr.bf16.mxu0 %v4373_v43  ;;  %3553 = vmatprep.subr.bf16.mxu1 %v4373_v43 }
  0xa9   : > { %v1936_v41 = vrot.slane %v1929_v39, %v1935_v38  ;;  %v1940_v44 = vrot.slane %v1929_v39, %v1939_v40  ;;  %v2151_v38 = vld [vmem:[#allocation5 + $0x168] sm:$0xff]  ;;  %v2153_v39 = vld [vmem:[#allocation5 + $0x178] sm:$0xff] }
  0xaa   : > { %3279 = vmatmul.mubr.msk.f32.vlgmr.msra.gmra.mrb[2].mxu0 %vm394_vm3, %v742_v61  ;;  %3295 = vmatmul.mubr.msk.f32.vlgmr.msra.gmra.mrb[2].mxu1 %vm394_vm3, %v3267_v5  ;;  %v1959_v61 = vld [vmem:[#allocation5 + $0x20] sm:$0xff] }
  0xab   : > { %3505 = vmatpush1.bf16.msra.mxu0 %v4386_v49  ;;  %3555 = vmatpush1.bf16.msra.mxu1 %v4386_v49 }
  0xac   : > { %3508 = vmatprep.subr.msk.bf16.mxu0 %vm4292_vm2, %v4390_v50  ;;  %3558 = vmatprep.subr.msk.bf16.mxu1 %vm4292_vm2, %v4390_v50 }
  0xad   : > { %1478 = vmatprep.mubr.f32.mxu0 %v4078_v0  ;;  %1843 = vmatprep.mubr.f32.mxu1 %v4078_v0 }
  0xaf   : > { %3511 = vmatpush1.bf16.msk.msra.mxu0 %vm4292_vm2, %v4398_v55  ;;  %3561 = vmatpush1.bf16.msk.msra.mxu1 %vm4292_vm2, %v4398_v55  ;;  %v1960_v55 = vld [vmem:[#allocation5 + $0x28] sm:$0xff] }
  0xb0   : > { %3513 = vmatprep.subr.bf16.mxu0 %v4406_v56  ;;  %3563 = vmatprep.subr.bf16.mxu1 %v4406_v56  ;;  %v1962_v56 = vld [vmem:[#allocation5 + $0x38] sm:$0xff] }
  0xb1   : > { %v3592_v60 = vpack.c.bf16 %v1962_v56, %v1960_v55  ;;  %v2239_v55 = vld [vmem:[#allocation5 + $0x1c0] sm:$0xff] }
  0xb2   : > { %3282 = vmatmul.mubr.msk.f32.vlgmr.msra.gmra.mrb[2].mxu0 %vm394_vm3, %v3267_v5  ;;  %3298 = vmatmul.mubr.msk.f32.vlgmr.msra.gmra.mrb[2].mxu1 %vm394_vm3, %v3283_v4  ;;  %v1963_v5 = vld [vmem:[#allocation5 + $0x40] sm:$0xff] }
  0xb3   : > { %3515 = vmatpush1.bf16.msra.mxu0 %v4417_v62  ;;  %3565 = vmatpush1.bf16.msra.mxu1 %v4417_v62  ;;  %v1961_v62 = vld [vmem:[#allocation5 + $0x30] sm:$0xff]  ;;  %v2158_v56 = vld [vmem:[#allocation5 + $0x1a0] sm:$0xff] }
  0xb4   : > { %3518 = vmatprep.subr.msk.bf16.mxu0 %vm4292_vm2, %v4421_v63  ;;  %3568 = vmatprep.subr.msk.bf16.mxu1 %vm4292_vm2, %v4421_v63  ;;  %v1964_v63 = vld [vmem:[#allocation5 + $0x48] sm:$0xff]  ;;  %v3594_v2 = vpack.c.bf16 %v1961_v62, %v1959_v61  ;;  %v4586_v62 = vpack.c.bf16 %v2239_v55, %v2237_v54  ;;  %v2810_v55 = vld [vmem:[#allocation7 + $0x40] sm:$0xff] }
  0xb5   : > { %1555 = vmatprep.mubr.f32.mxu0 %v4078_v0  ;;  %1920 = vmatprep.mubr.f32.mxu1 %v4078_v0 }
  0xb7   : > { %3521 = vmatpush1.bf16.msk.msra.mxu0 %vm4292_vm2, %v4428_v3  ;;  %3571 = vmatpush1.bf16.msk.msra.mxu1 %vm4292_vm2, %v4428_v3  ;;  %v3596_v3 = vpack.c.bf16 %v1966_v1, %v1964_v63 }
  0xb8   : > { %3653 = vmatprep.subr.bf16.mxu1 %v3572_v8  ;;  %3573 = vmatprep.subr.bf16.mxu0 %v3572_v8 }
  0xba   : > { %3286 = vmatmul.mubr.msk.f32.vlgmr.msra.gmra.mrb[2].mxu0 %vm394_vm3, %v3283_v4  ;;  %3302 = vmatmul.mubr.msk.f32.vlgmr.msra.gmra.mrb[2].mxu1 %vm394_vm3, %v3299_v14  ;;  %v1965_v4 = vld [vmem:[#allocation5 + $0x50] sm:$0xff]  ;;  %v4568_v14 = vld [vmem:[#allocation5 + $0x88] sm:$0xff] }
  0xbb   : > { %3655 = vmatpush1.bf16.msra.mxu1 %v3574_v15  ;;  %2490 = vmatprep.mubr.f32.mxu1 %v4078_v0  ;;  %v3598_v8 = vpack.c.bf16 %v1965_v4, %v1963_v5  ;;  %v2246_v5 = vld [vmem:[#allocation5 + $0x1f8] sm:$0xff]  ;;  %v2248_v4 = vld [vmem:[#allocation5 + $0x208] sm:$0xff] }
  0xbc   : > { %3657 = vmatprep.subr.bf16.mxu1 %v3576_v16  ;;  %3575 = vmatpush1.bf16.msra.mxu0 %v3574_v15  ;;  %v2143_v15 = vld [vmem:[#allocation5 + $0x128] sm:$0xff]  ;;  %v3628_v7 = vpack.c.bf16 %v2248_v4, %v2246_v5  ;;  %v2831_v5 = vld [vmem:[#allocation7 + $0xe8] sm:$0xff] }
  0xbd   : > { %3577 = vmatprep.subr.bf16.mxu0 %v3576_v16  ;;  %2060 = vmatprep.mubr.f32.mxu0 %v4078_v0  ;;  %v2145_v16 = vld [vmem:[#allocation5 + $0x138] sm:$0xff] }
  0xbe   : > { %v4573_v18 = vpack.c.bf16 %v2145_v16, %v2143_v15  ;;  %v2249_v15 = vld [vmem:[#allocation5 + $0x210] sm:$0xff]  ;;  %v2251_v16 = vld [vmem:[#allocation5 + $0x220] sm:$0xff] }
  0xbf   : > { %3659 = vmatpush1.bf16.msra.mxu1 %v3578_v19 }
  0xc0   : > { %3579 = vmatpush1.bf16.msra.mxu0 %v3578_v19  ;;  %3661 = vmatprep.subr.bf16.mxu1 %v3580_v21 }
  0xc1   : > { %3581 = vmatprep.subr.bf16.mxu0 %v3580_v21 }
  0xc3   : > { %3663 = vmatpush1.bf16.msra.mxu1 %v3582_v24 }
  0xc4   : > { %3583 = vmatpush1.bf16.msra.mxu0 %v3582_v24  ;;  %3665 = vmatprep.subr.bf16.mxu1 %v3584_v27 }
  0xc5   : > { %3585 = vmatprep.subr.bf16.mxu0 %v3584_v27  ;;  %v2144_v27 = vld [vmem:[#allocation5 + $0x130] sm:$0xff] }
  0xc7   : > { %3667 = vmatpush1.bf16.msra.mxu1 %v3586_v30 }
  0xc8   : > { %3587 = vmatpush1.bf16.msra.mxu0 %v3586_v30  ;;  %2442 = vmatprep.subr.mxu1 %v1991_v31  ;;  %v2149_v30 = vld [vmem:[#allocation5 + $0x158] sm:$0xff] }
  0xc9   : > { %2012 = vmatprep.subr.mxu0 %v1991_v31  ;;  %v3608_v34 = vpack.c.bf16 %v2149_v30, %v2147_v29  ;;  %v2336_v29 = vld [vmem:[#allocation5 + $0x260] sm:$0xff]  ;;  %v2338_v30 = vld [vmem:[#allocation5 + $0x270] sm:$0xff] }
  0xcb   : > { %2443 = vmatpush1.msra.mxu1 %v1990_v32 }
  0xcc   : > { %2013 = vmatpush1.msra.mxu0 %v1990_v32  ;;  %3669 = vmatprep.subr.bf16.mxu1 %v3588_v35  ;;  %v3606_v32 = vpack.c.bf16 %v2144_v27, %v2142_v26 }
  0xcd   : > { %3589 = vmatprep.subr.bf16.mxu0 %v3588_v35  ;;  %v2146_v35 = vld [vmem:[#allocation5 + $0x140] sm:$0xff] }
  0xce   : > { %v3610_v40 = vpack.c.bf16 %v2148_v36, %v2146_v35  ;;  %v2340_v36 = vld [vmem:[#allocation5 + $0x280] sm:$0xff] }
 0x165   : > { %v827_v42 = vpop.f32.mrb[0].mxu0  ;;  %v1192_v43 = vpop.f32.mrb[0].mxu1 }
 0x166   : > { %v1930_v45 = vmax.f32 %v827_v42, %v1192_v43  ;;  %v829_v46 = vpop.f32.mrb[1].mxu0  ;;  %v1194_v47 = vpop.f32.mrb[1].mxu1  ;;  %v2150_v42 = vld [vmem:[#allocation5 + $0x160] sm:$0xff]  ;;  %v2152_v43 = vld [vmem:[#allocation5 + $0x170] sm:$0xff] }
 0x167   : > { %v1931_v48 = vmax.f32 %v829_v46, %v1194_v47  ;;  %v3614_v46 = vpack.c.bf16 %v2152_v43, %v2150_v42  ;;  %v2346_v42 = vld [vmem:[#allocation5 + $0x2b0] sm:$0xff] }
 0x168   : > { %v1943_v49 = vadd.f32 %v1936_v41, %v1930_v45  ;;  %v2157_v45 = vld [vmem:[#allocation5 + $0x198] sm:$0xff] }
 0x169   : > { %v1944_v50 = vadd.f32 %v1940_v44, %v1931_v48  ;;  %v2154_v48 = vld [vmem:[#allocation5 + $0x180] sm:$0xff] }
 0x16a   : > { %v1945_v51 = vmax.f32 %v1943_v49, 0.0  ;;  %v2156_v49 = vld [vmem:[#allocation5 + $0x190] sm:$0xff] }
 0x16b   : > { %v1946_v52 = vmax.f32 %v1944_v50, 0.0  ;;  %v3618_v50 = vpack.c.bf16 %v2156_v49, %v2154_v48  ;;  %v2802_v48 = vld [vmem:[#allocation7] sm:$0xff] }
 0x16d   : > { %v4561_v57 = vmax.f32 %v1945_v51, %v1946_v52  ;;  %v2159_v51 = vld [vmem:[#allocation5 + $0x1a8] sm:$0xff]  ;;  %v2238_v52 = vld [vmem:[#allocation5 + $0x1b8] sm:$0xff] }
 0x16e   : > { %v3620_v61 = vpack.c.bf16 %v2240_v53, %v2238_v52  ;;  %v2815_v52 = vld [vmem:[#allocation7 + $0x68] sm:$0xff] }
 0x16f   : > { %v2160_v59 = vrot.slane %v4561_v57, 1  ;;  %v2350_v27 = vrot.slane %v4561_v57, 2 }
 0x171   : > { %3308 = vmatmul.mubr.msk.f32.vlgmr.msra.gmra.mrb[4].mxu1 %vm1992_vm4, %v2160_v59 }
 0x172   : > { %3671 = vmatpush1.bf16.msra.mxu1 %v3590_v58  ;;  %2561 = vmatprep.mubr.f32.mxu1 %v4078_v0 }
 0x173   : > { %3673 = vmatprep.subr.bf16.mxu1 %v3592_v60 }
 0x176   : > { %3675 = vmatpush1.bf16.msra.mxu1 %v3594_v2 }
 0x177   : > { %3677 = vmatprep.subr.bf16.mxu1 %v3596_v3 }
 0x17a   : > { %3679 = vmatpush1.bf16.msra.mxu1 %v3598_v8 }
 0x17b   : > { %3681 = vmatprep.subr.bf16.mxu1 %v3600_v9 }
 0x17e   : > { %3683 = vmatpush1.bf16.msra.mxu1 %v3602_v13 }
 0x17f   : > { %2513 = vmatprep.subr.mxu1 %v4568_v14 }
 0x182   : > { %2514 = vmatpush1.msra.mxu1 %v4571_v17 }
 0x183   : > { %3685 = vmatprep.subr.bf16.mxu1 %v4573_v18 }
 0x18d   : > { %v1557_v19 = vpop.f32.mrb[2].mxu0  ;;  %v1922_v10 = vpop.f32.mrb[2].mxu1 }
 0x18e   : > { %v1947_v20 = vmax.f32 %v1557_v19, %v1922_v10  ;;  %v1559_v21 = vpop.f32.mrb[3].mxu0  ;;  %v1924_v22 = vpop.f32.mrb[3].mxu1  ;;  %v2333_v19 = vld [vmem:[#allocation5 + $0x248] sm:$0xff]  ;;  %v2335_v10 = vld [vmem:[#allocation5 + $0x258] sm:$0xff] }
 0x18f   : > { %v1948_v23 = vmax.f32 %v1559_v21, %v1924_v22  ;;  %v2334_v21 = vld [vmem:[#allocation5 + $0x250] sm:$0xff] }
 0x190   : > { %v1949_v24 = vadd.f32 %v1947_v20, %v1936_v41  ;;  %v3612_v41 = vpack.c.bf16 %v2153_v39, %v2151_v38  ;;  %v2332_v20 = vld [vmem:[#allocation5 + $0x240] sm:$0xff]  ;;  %v2253_v22 = vld [vmem:[#allocation5 + $0x230] sm:$0xff]  ;;  %v2345_v39 = vld [vmem:[#allocation5 + $0x2a8] sm:$0xff] }
 0x191   : > { %v1950_v25 = vadd.f32 %v1948_v23, %v1940_v44  ;;  %v2155_v44 = vld [vmem:[#allocation5 + $0x188] sm:$0xff]  ;;  %v3638_v26 = vpack.c.bf16 %v2334_v21, %v2332_v20  ;;  %v2342_v38 = vld [vmem:[#allocation5 + $0x290] sm:$0xff] }
 0x192   : > { %v1951_v28 = vmax.f32 %v1949_v24, 0.0  ;;  %v3616_v47 = vpack.c.bf16 %v2157_v45, %v2155_v44  ;;  %v2337_v23 = vld [vmem:[#allocation5 + $0x268] sm:$0xff]  ;;  %v2339_v24 = vld [vmem:[#allocation5 + $0x278] sm:$0xff]  ;;  %v2348_v45 = vld [vmem:[#allocation5 + $0x2c0] sm:$0xff] }
 0x193   : > { %v1952_v31 = vmax.f32 %v1950_v25, 0.0  ;;  %v3636_v25 = vpack.c.bf16 %v2335_v10, %v2333_v19  ;;  %v2349_v44 = vld [vmem:[#allocation5 + $0x2c8] sm:$0xff] }
 0x195   : > { %v4577_v33 = vmax.f32 %v1951_v28, %v1952_v31  ;;  %v3640_v28 = vpack.c.bf16 %v2339_v24, %v2337_v23  ;;  %v2341_v31 = vld [vmem:[#allocation5 + $0x288] sm:$0xff]  ;;  %v2804_v24 = vld [vmem:[#allocation7 + $0x10] sm:$0xff] }
 0x197   : > { %3303 = vmatmul.mubr.msk.f32.vlgmr.msra.gmra.mrb[4].mxu0 %vm1992_vm4, %v4577_v33  ;;  %3309 = vmatmul.mubr.msk.f32.vlgmr.msra.gmra.mrb[4].mxu1 %vm1992_vm4, %v4577_v33  ;;  %v2255_v63 = vrot.slane %v4577_v33, 1 }
 0x198   : > { %3591 = vmatpush1.bf16.msra.mxu0 %v3590_v58  ;;  %3687 = vmatpush1.bf16.msra.mxu1 %v3606_v32  ;;  %v2242_v58 = vld [vmem:[#allocation5 + $0x1d8] sm:$0xff] }
 0x199   : > { %3593 = vmatprep.subr.bf16.mxu0 %v3592_v60  ;;  %3689 = vmatprep.subr.bf16.mxu1 %v3608_v34  ;;  %v2244_v60 = vld [vmem:[#allocation5 + $0x1e8] sm:$0xff] }
 0x19a   : > { %2134 = vmatprep.mubr.f32.mxu0 %v4078_v0  ;;  %2632 = vmatprep.mubr.f32.mxu1 %v4078_v0  ;;  %v4590_v1 = vpack.c.bf16 %v2244_v60, %v2242_v58  ;;  %v2819_v60 = vld [vmem:[#allocation7 + $0x88] sm:$0xff] }
 0x19c   : > { %3595 = vmatpush1.bf16.msra.mxu0 %v3594_v2  ;;  %3691 = vmatpush1.bf16.msra.mxu1 %v3610_v40  ;;  %v2241_v2 = vld [vmem:[#allocation5 + $0x1d0] sm:$0xff] }
 0x19d   : > { %3597 = vmatprep.subr.bf16.mxu0 %v3596_v3  ;;  %3693 = vmatprep.subr.bf16.mxu1 %v3612_v41  ;;  %v2243_v3 = vld [vmem:[#allocation5 + $0x1e0] sm:$0xff] }
 0x19e   : > { %v3626_v6 = vpack.c.bf16 %v2243_v3, %v2241_v2  ;;  %v2827_v3 = vld [vmem:[#allocation7 + $0xc8] sm:$0xff] }
 0x19f   : > { %v3744_v4 = vpack.c.bf16 %v2831_v5, %v2827_v3  ;;  %v3052_v3 = vld [vmem:[%s4743_s7 + $0x70] sm:$0xff]  ;;  %v3053_v5 = vld [vmem:[%s4743_s7 + $0x78] sm:$0xff] }
 0x1a0   : > { %3599 = vmatpush1.bf16.msra.mxu0 %v3598_v8  ;;  %3695 = vmatpush1.bf16.msra.mxu1 %v3614_v46  ;;  %v2245_v8 = vld [vmem:[#allocation5 + $0x1f0] sm:$0xff] }
 0x1a1   : > { %3601 = vmatprep.subr.bf16.mxu0 %v3600_v9  ;;  %3697 = vmatprep.subr.bf16.mxu1 %v3616_v47  ;;  %v2247_v9 = vld [vmem:[#allocation5 + $0x200] sm:$0xff] }
 0x1a4   : > { %3603 = vmatpush1.bf16.msra.mxu0 %v3602_v13  ;;  %3699 = vmatpush1.bf16.msra.mxu1 %v3618_v50  ;;  %v3630_v13 = vpack.c.bf16 %v2247_v9, %v2245_v8  ;;  %v2805_v9 = vld [vmem:[#allocation7 + $0x18] sm:$0xff] }
 0x1a5   : > { %2086 = vmatprep.subr.mxu0 %v4568_v14  ;;  %2584 = vmatprep.subr.mxu1 %v2159_v51  ;;  %v3632_v14 = vpack.c.bf16 %v2252_v12, %v2250_v11  ;;  %v2809_v11 = vld [vmem:[#allocation7 + $0x38] sm:$0xff] }
 0x1a6   : > { %v3748_v12 = vpack.c.bf16 %v2809_v11, %v2805_v9 }
 0x1a8   : > { %2087 = vmatpush1.msra.mxu0 %v4571_v17  ;;  %2585 = vmatpush1.msra.mxu1 %v2158_v56  ;;  %v3634_v17 = vpack.c.bf16 %v2251_v16, %v2249_v15  ;;  %v4080_v15 = vmov 0.0|0.0  }
 0x1a9   : > { %3304 = vmatmul.mubr.msk.f32.vlgmr.msra.gmra.mrb[4].mxu0 %vm1992_vm4, %v4561_v57  ;;  %3605 = vmatprep.subr.bf16.mxu0 %v4573_v18  ;;  %v2254_v18 = vld [vmem:[#allocation5 + $0x238] sm:$0xff] }
 0x1aa   : > { %3310 = vmatmul.mubr.msk.f32.vlgmr.msra.gmra.mrb[4].mxu1 %vm1992_vm4, %v2255_v63  ;;  %3701 = vmatprep.subr.bf16.mxu1 %v3620_v61  ;;  %v2347_v57 = vld [vmem:[#allocation5 + $0x2b8] sm:$0xff] }
 0x1ab   : > { %3607 = vmatpush1.bf16.msra.mxu0 %v3606_v32  ;;  %3703 = vmatpush1.bf16.msra.mxu1 %v4586_v62  ;;  %v2343_v32 = vld [vmem:[#allocation5 + $0x298] sm:$0xff] }
 0x1ac   : > { %3609 = vmatprep.subr.bf16.mxu0 %v3608_v34  ;;  %3705 = vmatprep.subr.bf16.mxu1 %v4590_v1  ;;  %v3642_v34 = vpack.c.bf16 %v2338_v30, %v2336_v29  ;;  %v3644_v35 = vpack.c.bf16 %v2343_v32, %v2341_v31  ;;  %v2812_v32 = vld [vmem:[#allocation7 + $0x50] sm:$0xff] }
 0x1ad   : > { %2227 = vmatprep.mubr.f32.mxu0 %v4078_v0  ;;  %2705 = vmatprep.mubr.f32.mxu1 %v4078_v0 }
 0x1af   : > { %3611 = vmatpush1.bf16.msra.mxu0 %v3610_v40  ;;  %3707 = vmatpush1.bf16.msra.mxu1 %v3626_v6  ;;  %v3648_v40 = vpack.c.bf16 %v2347_v57, %v2345_v39  ;;  %v2820_v57 = vld [vmem:[#allocation7 + $0x90] sm:$0xff] }
 0x1b0   : > { %3613 = vmatprep.subr.bf16.mxu0 %v3612_v41  ;;  %3709 = vmatprep.subr.bf16.mxu1 %v3628_v7  ;;  %v2344_v41 = vld [vmem:[#allocation5 + $0x2a0] sm:$0xff] }
 0x1b1   : > { %v3650_v43 = vpack.c.bf16 %v2346_v42, %v2344_v41  ;;  %v2833_v41 = vld [vmem:[#allocation7 + $0xf8] sm:$0xff] }
 0x1b3   : > { %3615 = vmatpush1.bf16.msra.mxu0 %v3614_v46  ;;  %3711 = vmatpush1.bf16.msra.mxu1 %v3630_v13  ;;  %v2714_v46 = vrot.slane %v4577_v33, 2  ;;  %v2803_v33 = vld [vmem:[#allocation7 + $0x8] sm:$0xff] }
 0x1b4   : > { %3617 = vmatprep.subr.bf16.mxu0 %v3616_v47  ;;  %3713 = vmatprep.subr.bf16.mxu1 %v3632_v14  ;;  %v2807_v47 = vld [vmem:[#allocation7 + $0x28] sm:$0xff] }
 0x1b5   : > { %v3732_v49 = vpack.c.bf16 %v2807_v47, %v2803_v33  ;;  %v3040_v33 = vld [vmem:[%s4743_s7 + $0x10] sm:$0xff]  ;;  %v3041_v47 = vld [vmem:[%s4743_s7 + $0x18] sm:$0xff] }
 0x1b7   : > { %3619 = vmatpush1.bf16.msra.mxu0 %v3618_v50  ;;  %3715 = vmatpush1.bf16.msra.mxu1 %v3634_v17  ;;  %v2806_v50 = vld [vmem:[#allocation7 + $0x20] sm:$0xff] }
 0x1b8   : > { %2179 = vmatprep.subr.mxu0 %v2159_v51  ;;  %2657 = vmatprep.subr.mxu1 %v2254_v18  ;;  %v2811_v51 = vld [vmem:[#allocation7 + $0x48] sm:$0xff]  ;;  %v3734_v53 = vpack.c.bf16 %v2806_v50, %v2802_v48  ;;  %v3768_v48 = vpack.c.bf16 %v3041_v47, %v3040_v33  ;;  %v3043_v50 = vld [vmem:[%s4743_s7 + $0x28] sm:$0xff] }
 0x1b9   : > { %v3736_v54 = vpack.c.bf16 %v2815_v52, %v2811_v51  ;;  %v3044_v52 = vld [vmem:[%s4743_s7 + $0x30] sm:$0xff] }
 0x1bb   : > { %2180 = vmatpush1.msra.mxu0 %v2158_v56  ;;  %2658 = vmatpush1.msra.mxu1 %v2253_v22  ;;  %v2814_v56 = vld [vmem:[#allocation7 + $0x60] sm:$0xff] }
 0x1bc   : > { %3305 = vmatmul.mubr.msk.f32.vlgmr.msra.gmra.mrb[4].mxu0 %vm1992_vm4, %v2160_v59  ;;  %3621 = vmatprep.subr.bf16.mxu0 %v3620_v61  ;;  %v3646_v59 = vpack.c.bf16 %v2342_v38, %v2340_v36  ;;  %v3738_v58 = vpack.c.bf16 %v2814_v56, %v2810_v55  ;;  %v2823_v61 = vld [vmem:[#allocation7 + $0xa8] sm:$0xff]  ;;  %v2825_v36 = vld [vmem:[#allocation7 + $0xb8] sm:$0xff] }
 0x1bd   : > { %3311 = vmatmul.mubr.msk.f32.vlgmr.msra.gmra.mrb[4].mxu1 %vm1992_vm4, %v2350_v27  ;;  %3717 = vmatprep.subr.bf16.mxu1 %v3636_v25  ;;  %v3047_v56 = vld [vmem:[%s4743_s7 + $0x48] sm:$0xff] }
 0x1be   : > { %3623 = vmatpush1.bf16.msra.mxu0 %v4586_v62  ;;  %3719 = vmatpush1.bf16.msra.mxu1 %v3638_v26  ;;  %v3740_v62 = vpack.c.bf16 %v2823_v61, %v2819_v60  ;;  %v3048_v60 = vld [vmem:[%s4743_s7 + $0x50] sm:$0xff]  ;;  %v3049_v61 = vld [vmem:[%s4743_s7 + $0x58] sm:$0xff] }
 0x1bf   : > { %3625 = vmatprep.subr.bf16.mxu0 %v4590_v1  ;;  %3721 = vmatprep.subr.bf16.mxu1 %v3640_v28  ;;  %v2822_v1 = vld [vmem:[#allocation7 + $0xa0] sm:$0xff] }
 0x1c0   : > { %2322 = vmatprep.mubr.f32.mxu0 %v4078_v0  ;;  %2781 = vmatprep.mubr.f32.mxu1 %v4078_v0 }
 0x1c2   : > { %3627 = vmatpush1.bf16.msra.mxu0 %v3626_v6  ;;  %3723 = vmatpush1.bf16.msra.mxu1 %v3642_v34  ;;  %v2826_v6 = vld [vmem:[#allocation7 + $0xc0] sm:$0xff] }
 0x1c3   : > { %3629 = vmatprep.subr.bf16.mxu0 %v3628_v7  ;;  %3725 = vmatprep.subr.bf16.mxu1 %v3644_v35  ;;  %v2830_v7 = vld [vmem:[#allocation7 + $0xe0] sm:$0xff] }
 0x1c4   : > { %v3746_v8 = vpack.c.bf16 %v2830_v7, %v2826_v6  ;;  %v4082_v6 = vmov 1966171168  }
 0x1c5   : > { %v2984_v7 = vunpack.c.l.s4 %v4082_v6 }
 0x1c6   : > { %3631 = vmatpush1.bf16.msra.mxu0 %v3630_v13  ;;  %3727 = vmatpush1.bf16.msra.mxu1 %v3646_v59  ;;  %v3038_v13 = vld [vmem:[%s4743_s7] sm:$0xff] }
 0x1c7   : > { %3633 = vmatprep.subr.bf16.mxu0 %v3632_v14  ;;  %3729 = vmatprep.subr.bf16.mxu1 %v3648_v40  ;;  %v3039_v14 = vld [vmem:[%s4743_s7 + $0x8] sm:$0xff] }
 0x1c8   : > { %v3765_v16 = vpack.c.bf16 %v3039_v14, %v3038_v13  ;;  %v2980_v14 = vld [vmem:[%s4742_s6] sm:$0x1] }
 0x1ca   : > { %3635 = vmatpush1.bf16.msra.mxu0 %v3634_v17  ;;  %3731 = vmatpush1.bf16.msra.mxu1 %v3650_v43 }
 0x1cb   : > { %2274 = vmatprep.subr.mxu0 %v2254_v18  ;;  %2733 = vmatprep.subr.mxu1 %v2349_v44 }
 0x1ce   : > { %2275 = vmatpush1.msra.mxu0 %v2253_v22  ;;  %2734 = vmatpush1.msra.mxu1 %v2348_v45  ;;  %v3313_v22 = vld [vmem:[%s4740_s4] ss:$0 sm:$0xff] }
 0x1cf   : > { %3306 = vmatmul.mubr.msk.f32.vlgmr.msra.gmra.mrb[4].mxu0 %vm1992_vm4, %v2255_v63  ;;  %3637 = vmatprep.subr.bf16.mxu0 %v3636_v25  ;;  %v2818_v63 = vld [vmem:[#allocation7 + $0x80] sm:$0xff]  ;;  %v2808_v25 = vld [vmem:[#allocation7 + $0x30] sm:$0xff] }
 0x1d0   : > { %3312 = vmatmul.mubr.msk.f32.vlgmr.msra.gmra.mrb[4].mxu1 %vm1992_vm4, %v2714_v46  ;;  %3639 = vmatpush1.bf16.msra.mxu0 %v3638_v26  ;;  %v3742_v2 = vpack.c.bf16 %v2822_v1, %v2818_v63  ;;  %v2813_v26 = vld [vmem:[#allocation7 + $0x58] sm:$0xff]  ;;  %v3750_v29 = vpack.c.bf16 %v2808_v25, %v2804_v24  ;;  %v3050_v63 = vld [vmem:[%s4743_s7 + $0x60] sm:$0xff] }
 0x1d1   : > { %3641 = vmatprep.subr.bf16.mxu0 %v3640_v28  ;;  %2417 = vmatprep.mubr.f32.mxu0 %v4078_v0  ;;  %v3051_v1 = vld [vmem:[%s4743_s7 + $0x68] sm:$0xff] }
 0x1d2   : > { %2902 = vmatprep.mubr.f32.mxu1 %v4078_v0  ;;  %3733 = vmatprep.subr.bf16.mxu1 %v3732_v49  ;;  %v3042_v49 = vld [vmem:[%s4743_s7 + $0x20] sm:$0xff] }
 0x1d3   : > { %3735 = vmatpush1.bf16.msra.mxu1 %v3734_v53  ;;  %v3771_v51 = vpack.c.bf16 %v3043_v50, %v3042_v49  ;;  %v3045_v53 = vld [vmem:[%s4743_s7 + $0x38] sm:$0xff] }
 0x1d4   : > { %3643 = vmatpush1.bf16.msra.mxu0 %v3642_v34  ;;  %3737 = vmatprep.subr.bf16.mxu1 %v3736_v54  ;;  %v2816_v34 = vld [vmem:[#allocation7 + $0x70] sm:$0xff]  ;;  %v3774_v55 = vpack.c.bf16 %v3045_v53, %v3044_v52 }
 0x1d5   : > { %3645 = vmatprep.subr.bf16.mxu0 %v3644_v35  ;;  %v2821_v35 = vld [vmem:[#allocation7 + $0x98] sm:$0xff]  ;;  %v3754_v38 = vpack.c.bf16 %v2816_v34, %v2812_v32  ;;  %v3046_v54 = vld [vmem:[%s4743_s7 + $0x40] sm:$0xff] }
 0x1d6   : > { %v3756_v39 = vpack.c.bf16 %v2825_v36, %v2821_v35 }
 0x1d7   : > { %3739 = vmatpush1.bf16.msra.mxu1 %v3738_v58  ;;  %v3777_v58 = vpack.c.bf16 %v3047_v56, %v3046_v54 }
 0x1d8   : > { %3647 = vmatpush1.bf16.msra.mxu0 %v3646_v59  ;;  %3741 = vmatprep.subr.bf16.mxu1 %v3740_v62  ;;  %v2824_v59 = vld [vmem:[#allocation7 + $0xb0] sm:$0xff]  ;;  %v3780_v62 = vpack.c.bf16 %v3049_v61, %v3048_v60 }
 0x1d9   : > { %3649 = vmatprep.subr.bf16.mxu0 %v3648_v40  ;;  %v2829_v40 = vld [vmem:[#allocation7 + $0xd8] sm:$0xff]  ;;  %v3758_v42 = vpack.c.bf16 %v2824_v59, %v2820_v57 }
 0x1db   : > { %3743 = vmatpush1.bf16.msra.mxu1 %v3742_v2  ;;  %v3783_v2 = vpack.c.bf16 %v3051_v1, %v3050_v63 }
 0x1dc   : > { %3651 = vmatpush1.bf16.msra.mxu0 %v3650_v43  ;;  %3745 = vmatprep.subr.bf16.mxu1 %v3744_v4  ;;  %v3760_v43 = vpack.c.bf16 %v2833_v41, %v2829_v40  ;;  %v3786_v4 = vpack.c.bf16 %v3053_v5, %v3052_v3 }
 0x1dd   : > { %2369 = vmatprep.subr.mxu0 %v2349_v44  ;;  %v2828_v44 = vld [vmem:[#allocation7 + $0xd0] sm:$0xff] }
 0x1df   : > { %3747 = vmatpush1.bf16.msra.mxu1 %v3746_v8  ;;  %v2985_v8 = vunpack.c.0.s8 %v2984_v7 }
 0x1e0   : > { %2370 = vmatpush1.msra.mxu0 %v2348_v45  ;;  %3749 = vmatprep.subr.bf16.mxu1 %v3748_v12  ;;  %v2832_v45 = vld [vmem:[#allocation7 + $0xf0] sm:$0xff] }
 0x1e1   : > { %3307 = vmatmul.mubr.msk.f32.vlgmr.msra.gmra.mrb[4].mxu0 %vm1992_vm4, %v2350_v27  ;;  %3764 = vmatprep.subr.bf16.mxu0 %v4080_v15  ;;  %v2817_v27 = vld [vmem:[#allocation7 + $0x78] sm:$0xff]  ;;  %v3762_v46 = vpack.c.bf16 %v2832_v45, %v2828_v44  ;;  %v2988_v9 = vsub.s32 %v2985_v8, %v4554_v37 }
 0x1e2   : > { %3766 = vmatpush3.bf16.msra.mxu0 %v3765_v16  ;;  %v3752_v31 = vpack.c.bf16 %v2817_v27, %v2813_v26  ;;  %3369 = vmatprep.mubr.msk.f32.mxu0 %vm4081_vm6, %v4078_v0 }
 0x1e3   : > { %3767 = vmatprep.subr.bf16.mxu0 %v4080_v15 }
 0x1e6   : > { %3769 = vmatpush3.bf16.msra.mxu0 %v3768_v48 }
 0x1e7   : > { %3770 = vmatprep.subr.bf16.mxu0 %v4080_v15 }
 0x1ea   : > { %3772 = vmatpush3.bf16.msra.mxu0 %v3771_v51 }
 0x1eb   : > { %3773 = vmatprep.subr.bf16.mxu0 %v4080_v15 }
 0x1ee   : > { %3775 = vmatpush3.bf16.msra.mxu0 %v3774_v55 }
 0x1ef   : > { %3776 = vmatprep.subr.bf16.mxu0 %v4080_v15 }
 0x1f2   : > { %3778 = vmatpush3.bf16.msra.mxu0 %v3777_v58 }
 0x1f3   : > { %3779 = vmatprep.subr.bf16.mxu0 %v4080_v15 }
 0x1f6   : > { %3781 = vmatpush3.bf16.msra.mxu0 %v3780_v62 }
 0x1f7   : > { %3782 = vmatprep.subr.bf16.mxu0 %v4080_v15 }
 0x1fa   : > { %3784 = vmatpush3.bf16.msra.mxu0 %v3783_v2 }
 0x1fb   : > { %3785 = vmatprep.subr.bf16.mxu0 %v4080_v15 }
 0x1fe   : > { %3787 = vmatpush3.bf16.msra.mxu0 %v3786_v4 }
 0x2a3   : > { %v2783_v17 = vpop.f32.mrb[4].mxu1 }
 0x2a4   : > { %v2785_v18 = vpop.f32.mrb[5].mxu1 }
 0x2a5   : > { %v2792_v19 = vmax.f32 %v2783_v17, %v2785_v18 }
 0x2b4   : > { %v2419_v10 = vpop.f32.mrb[4].mxu0 }
 0x2b5   : > { %v2421_v20 = vpop.f32.mrb[5].mxu0 }
 0x2b6   : > { %v2791_v21 = vmax.f32 %v2419_v10, %v2421_v20 }
 0x2b8   : > { %v2793_v23 = vmax.f32 %v2791_v21, %v2792_v19 }
 0x2ba   : > { %v2800_v28 = vadd.f32 %v3313_v22, %v2793_v23 }
 0x2bc   : > { %v2801_v30 = vmax.f32 %v2800_v28, 0.0  ;;  %v3054_v28 = vld [vmem:[%s4744_s8] sm:$0x1] }
 0x2be   : > { %3314 = vmatmul.mubr.msk.f32.vlgmr.msra.gmra.mrb[6].mxu1 %vm2834_vm5, %v2801_v30 }
 0x2bf   : > { %3751 = vmatpush1.bf16.msra.mxu1 %v3750_v29  ;;  %2973 = vmatprep.mubr.f32.mxu1 %v4078_v0 }
 0x2c0   : > { %3753 = vmatprep.subr.bf16.mxu1 %v3752_v31 }
 0x2c3   : > { %3755 = vmatpush1.bf16.msra.mxu1 %v3754_v38 }
 0x2c4   : > { %3757 = vmatprep.subr.bf16.mxu1 %v3756_v39 }
 0x2c7   : > { %3759 = vmatpush1.bf16.msra.mxu1 %v3758_v42 }
 0x2c8   : > { %3761 = vmatprep.subr.bf16.mxu1 %v3760_v43 }
 0x2cb   : > { %3763 = vmatpush1.bf16.msra.mxu1 %v3762_v46 }
 0x2ce   : > { %3315 = vmatmul.mubr.msk.f32.vlgmr.msra.gmra.mrb[8].mxu1 %vm2834_vm5, %v2801_v30 }
 0x391   : > { %v2904_v11 = vpop.f32.mrb[6].mxu1 }
 0x392   : > { %v2906_v12 = vpop.f32.mrb[7].mxu1  ;;  %v2981_v16 = vadd.f32 %v2980_v14, %v2904_v11 }
 0x393   : > { %v2989_v13 = vrot.slane %v2906_v12, %v2988_v9 }
 0x395   : > { %v2990_v15 = vcombine.high %v2989_v13, %v2989_v13 }
 0x397   : > { %v2997_v17 = vrot.slane %v2990_v15, %v2988_v9 }
 0x399   : > { %v2999_v18 = vadd.f32 %v2997_v17, %v2981_v16 }
 0x3a1   : > { %v2975_v19 = vpop.f32.mrb[8].mxu1 }
 0x3a2   : > { %v3007_v0 = vrot.slane %v2975_v19, %v2988_v9  ;;  %v2977_v10 = vpop.f32.mrb[9].mxu1 }
 0x3a3   : > { %v3025_v20 = vrot.slane %v2977_v10, %v2988_v9 }
 0x3a4   : > { %v3014_v21 = vrot.slane %v3007_v0, %v2988_v9 }
 0x3a5   : > { %v3026_v22 = vcombine.high %v3025_v20, %v3025_v20 }
 0x3a6   : > { %v3015_v37 = vcombine.high %v3014_v21, %v3014_v21 }
 0x3a7   : > { %v3033_v23 = vrot.slane %v3026_v22, %v2988_v9 }
 0x3a8   : > { %v3017_v24 = vadd.f32 %v3015_v37, %v2999_v18 }
 0x3a9   : > { %v3034_v25 = vcombine.high %v3033_v23, %v3033_v23 }
 0x3ab   : > { %v3036_v26 = vadd.f32 %v3034_v25, %v3017_v24 }
 0x3ad   : > { %v3037_v27 = vmax.f32 %v3036_v26, 0.0 }
 0x3af   : > { %3370 = vmatmul.mubr.f32.vlgmr.msra.gmra.mrb[6].mxu0 %v3037_v27 }
 0x482   : > { %v3121_v29 = vpop.f32.mrb[6].mxu0 }
 0x483   : > { %v3122_v30 = vadd.f32 %v3121_v29, %v3054_v28  ;;  %v3371_v31 = vpop.f32.mrb[7].mxu0 }
 0x485   : > { %3125 = vst [vmem:[%s368_s26] sm:$0x1] %v3122_v30 }
 0x486   : > { %4012 = shalt.err (!%p4009_p9)
}
 0x487   : > { %s4013_s15 = scalar_lea.hbm %s4694_s18, 16  ;;  %s4017_s22 = scalar_lea.hbm %s4745_s9, 32 }
 0x488   : > { %p4014_p2 = scmp.ne.s32.totalorder %s4694_s18, %s4013_s15  ;;  %p4018_p5 = scmp.lt.u32.totalorder %s4694_s18, %s4745_s9 }
 0x489   : > { %p4019_p10 = scmp.lt.u32.totalorder %s4017_s22, %s4013_s15  ;;  %p4021_p4 = scmp.lt.u32.totalorder %s4013_s15, %s4694_s18 }
 0x48a   : > { %p4015_p3 = pnand %p4014_p2, %p4771_p7 }
 0x48b   : > { %p4020_p12 = por %p4019_p10, %p4018_p5 }
 0x48c   : > { %p4016_p0 = pneg %p4015_p3 }
 0x48d   : > { %p4022_p8 = por %p4021_p4, %p4020_p12 }
 0x48f   : > { %p4023_p11 = pnand %p4022_p8, %p4016_p0 }
 0x491   : > { %4026 = shalt.err (!%p4023_p11)
}
 0x492   : > { %3848 = dma.vmem_to_hbm [thread:$0]  (%p4771_p7), %s4696_s14, 16, %s4694_s18, %s3127_s21  }
 0x493 PF: > { %s4772_s29 = sld [smem:[#allocation12_spill]]  ;;  %s4773_s23 = sld [smem:[#allocation16_spill]] }
 0x494   : > { %p3870_p13 = scmp.ge.s32.totalorder %s4069_s12, 2 }
 0x499   : > { %s3151_s26 = sand.u32 1, %s4772_s29   ;;  %p4774_p1 = scmp.ne.s32.totalorder %s4773_s23, 0 }
 0x49a   : > { %s3152_s16 = scalar_lea.sflag [#allocation4], %s3151_s26 }
 0x49b   : > { %p3861_p6 = pnand %p3870_p13, %p4774_p1 }
 0x49d   : > { %4052 = dma.done.wait (!%p3861_p6), %s3152_s16, 16  }
 0x49e   : > { %4054 = vsyncadd (!%p3861_p6), %s3152_s16, 4294967280  ;;  %s4775_s12 = sld [smem:[#allocation14_spill]]  ;;  %s4776_s24 = sld [smem:[#allocation13_spill]] }
 0x49f   : > { %s4777_s11 = sld [smem:[#allocation15_spill]]  ;;  %s4778_s30 = smov %s4061_s10 }
 0x4a4   : > { %p21_p9 = scmp.ge.s32.totalorder %s4775_s12, 4   ;;  %s4779_s10 = smov %s4776_s24 }
 0x4a6   :  { %23 = sbr.rel (!%p21_p9) target bundleno = 5 (0x5), region = 115 }
 0x4ad   :  { %3156 = vsyncpa [#allocation3], 1 }
 0x4ae   :  { %3158 = vsyncpa [#allocation3 + $0x1], 1 }
 0x4af   :  { %3159 = vsyncpa [#allocation6], 1 }
 0x4b0   :  { %3160 = vsyncpa [#allocation4], 1 }
 0x4b1   :  { %3162 = vsyncpa [#allocation4 + $0x1], 1 }

</bundles_post_ra>
